<compile_context>
chip_gen: v7x
topology: tpu7x:2x2x1
jax: 0.10.0
libtpu: 0.0.40
codegen_flags: <defaults>
</compile_context>

<pallas_src>
import functools

import jax
import jax.numpy as jnp
from jax.experimental import pallas as pl
from jax.experimental.pallas import tpu as pltpu


# Approximate MXU pass multiplier for f32 matmuls at each precision level
# (HIGHEST lowers to multi-pass bf16 emulation).  Advisory only (CostEstimate).
_MXU_PASSES = {
    jax.lax.Precision.DEFAULT: 1,
    jax.lax.Precision.HIGH: 3,
    jax.lax.Precision.HIGHEST: 6,
}


# ---------------------------------------------------------------------------
# Pallas kernel: fused 3-layer MLP forward, batch on the lane axis.
# ---------------------------------------------------------------------------
def _critic_kernel(is_tanh, precision, s_t_ref, w1_ref, b1_ref, w2_ref, b2_ref,
                   w3_ref, b3_ref, v_ref):
    def act(x):
        # activate_func = [ReLU, Tanh][is_tanh]  (selected at trace time)
        return jnp.tanh(x) if is_tanh else jnp.maximum(x, 0.0)

    s_t = s_t_ref[...]                                                 # [S, TB]
    h1 = act(jnp.dot(w1_ref[...], s_t, precision=precision,
                     preferred_element_type=jnp.float32) + b1_ref[...])  # [H, TB]
    h2 = act(jnp.dot(w2_ref[...], h1, precision=precision,
                     preferred_element_type=jnp.float32) + b2_ref[...])  # [H, TB]
    # fc3: (1, H) @ (H, TB) already yields a lane-dense (1, TB) row, so the
    # store needs no sublane->lane relayout.
    v = jnp.dot(w3_ref[...], h2, precision=precision,
                preferred_element_type=jnp.float32) + b3_ref[0, 0]       # [1, TB]
    v_ref[...] = v.astype(v_ref.dtype)


# ---------------------------------------------------------------------------
# Generation-aware tiling helpers.
# ---------------------------------------------------------------------------
def _num_tensorcores():
    """Best-effort TensorCores-per-chip count (2 on v7x, 1 on v5e/v6e)."""
    try:
        info = pltpu.get_tpu_info()
    except Exception:
        return 1
    for name in ("num_cores", "core_count", "num_tensorcores",
                 "num_tensor_cores", "tensor_cores_per_chip",
                 "cores_per_chip"):
        n = getattr(info, name, None)
        if n is None:
            continue
        try:
            n = int(n)
        except (TypeError, ValueError):
            continue
        if n >= 1:
            return n
    return 1


def _pick_batch_tile(batch, num_cores=1):
    """Lane-dense batch tile: a multiple of 128 lanes, or the whole batch."""
    # Small or ragged batches: one step (TB == B satisfies the
    # "block dim equals full array dim" rule even if B % 128 != 0).
    if batch <= 128 or batch % 128 != 0:
        return batch
    if num_cores >= 2:
        # Dual-TC (v7x): even step counts keep both cores busy; exactly two
        # steps minimizes per-step pipeline overhead.
        half = batch // 2
        if half % 128 == 0 and half <= 512:
            return half
        for tb in (512, 256, 128):
            if batch % tb == 0 and (batch // tb) % 2 == 0:
                return tb
        return batch
    # Single-TC (v5e/v6e): the grid is a serial loop, so one step unless the
    # [H, TB] f32 intermediates would grow into vreg-spill territory.
    if batch <= 512:
        return batch
    for tb in (512, 256, 128):
        if batch % tb == 0:
            return tb
    return batch


# ---------------------------------------------------------------------------
# Wrapper: prepare layouts, build specs, invoke the fused kernel.
# ---------------------------------------------------------------------------
def critic_forward(s, params, *, is_tanh=True, batch_tile=None,
                   precision=jax.lax.Precision.HIGHEST):
    """Critic forward pass with a single fused Pallas kernel.

    s: [B, state_dim] float32
    params (PyTorch layout): w1 [H,S], b1 [H], w2 [H,H], b2 [H], w3 [1,H], b3 [1]
    returns v_s: [B, 1] float32
    """
    B, S = s.shape
    H, S_w = params["w1"].shape
    assert S_w == S, "state_dim mismatch between s and w1"

    TB = batch_tile or _pick_batch_tile(B, _num_tensorcores())
    assert B % TB == 0, "batch must be divisible by batch_tile"
    assert TB % 128 == 0 or TB == B, (
        "batch_tile must be lane-dense (a multiple of 128) or the full batch")
    G = B // TB

    # Transposed dataflow: batch on the lane axis.
    s_t = s.T                                   # [S, B]
    w1 = params["w1"]                           # [H, S]  (PyTorch (out, in))
    w2 = params["w2"]                           # [H, H]
    w3 = params["w3"].reshape(1, H)             # [1, H]
    b1 = params["b1"].reshape(H, 1)             # column bias, broadcasts on lanes
    b2 = params["b2"].reshape(H, 1)
    b3 = params["b3"].reshape(1, 1)             # SMEM scalar

    kernel = functools.partial(_critic_kernel, bool(is_tanh), precision)

    passes = _MXU_PASSES.get(precision, _MXU_PASSES[jax.lax.Precision.HIGHEST])
    flops = 2 * B * (S * H + H * H + H) * passes
    transcendentals = 2 * B * H if is_tanh else 0
    bytes_accessed = 4 * (B * S                              # state in
                          + S * H + H + H * H + H + H + 1    # weights, once
                          + B)                               # output
    cost = pl.CostEstimate(flops=flops, transcendentals=transcendentals,
                           bytes_accessed=bytes_accessed)

    def run(single_buffer_weights):
        # Resident (constant block-index) weights/biases: single-buffer them so
        # their VMEM footprint doesn't double.  Irrelevant at H=64 but keeps
        # the kernel valid on v7x's 64 MiB VMEM if H ever grows.
        resident_kwargs = (
            {"pipeline_mode": pl.Buffered(1)} if single_buffer_weights else {})
        grid_spec = pltpu.PrefetchScalarGridSpec(
            num_scalar_prefetch=0,
            grid=(G,),
            in_specs=[
                # state (transposed): batch tiled on the lane axis
                pl.BlockSpec((S, TB), lambda i: (0, i)),
                pl.BlockSpec((H, S), lambda i: (0, 0), **resident_kwargs),   # w1
                pl.BlockSpec((H, 1), lambda i: (0, 0), **resident_kwargs),   # b1
                pl.BlockSpec((H, H), lambda i: (0, 0), **resident_kwargs),   # w2
                pl.BlockSpec((H, 1), lambda i: (0, 0), **resident_kwargs),   # b2
                pl.BlockSpec((1, H), lambda i: (0, 0), **resident_kwargs),   # w3
                pl.BlockSpec(memory_space=pltpu.MemorySpace.SMEM),           # b3
            ],
            # Lane-dense output slab: every step writes a disjoint (1, TB)
            # full-128-lane segment of the (1, B) row with an unmasked store.
            out_specs=pl.BlockSpec((1, TB), lambda i: (0, i)),
        )
        return pl.pallas_call(
            kernel,
            out_shape=jax.ShapeDtypeStruct((1, B), jnp.float32),
            grid_spec=grid_spec,
            compiler_params=pltpu.CompilerParams(
                dimension_semantics=("parallel",)),
            cost_estimate=cost,
        )(s_t, w1, b1, w2, b2, w3, b3)

    try:
        out = run(single_buffer_weights=True)
    except Exception:
        # pipeline_mode=pl.Buffered(1) unsupported on a top-level BlockSpec in
        # this jax build: fall back to default double-buffered resident weights
        # (identical math, a few hundred KiB extra VMEM at these shapes).
        out = run(single_buffer_weights=False)

    return out.reshape(B, 1)


# ---------------------------------------------------------------------------
# Deterministic parameter init (mirrors orthogonal_init: orthogonal weight,
# zero bias), plain JAX, PyTorch (out, in) layout.
# ---------------------------------------------------------------------------
def _orthogonal(key, out_features, in_features, gain=1.0):
    # Same semantics as torch.nn.init.orthogonal_ on a (out, in) matrix.
    a = jax.random.normal(key, (out_features, in_features), dtype=jnp.float32)
    transposed = out_features < in_features
    if transposed:
        a = a.T
    q, r = jnp.linalg.qr(a)
    q = q * jnp.sign(jnp.diagonal(r))  # make the decomposition unique
    if transposed:
        q = q.T
    return gain * q                    # shape (out, in)


def init_critic_params(key, state_dim, hidden_width):
    k1, k2, k3 = jax.random.split(key, 3)
    return {
        "w1": _orthogonal(k1, hidden_width, state_dim),      # (H, S)
        "b1": jnp.zeros((hidden_width,), jnp.float32),
        "w2": _orthogonal(k2, hidden_width, hidden_width),   # (H, H)
        "b2": jnp.zeros((hidden_width,), jnp.float32),
        "w3": _orthogonal(k3, 1, hidden_width),              # (1, H)
        "b3": jnp.zeros((1,), jnp.float32),
    }


# Pure-JAX reference (same math, same matmul precision) for the sanity check.
def critic_ref(s, params, *, is_tanh=True,
               precision=jax.lax.Precision.HIGHEST):
    act = jnp.tanh if is_tanh else (lambda x: jnp.maximum(x, 0.0))
    h1 = act(jnp.dot(s, params["w1"].T, precision=precision) + params["b1"])
    h2 = act(jnp.dot(h1, params["w2"].T, precision=precision) + params["b2"])
    return jnp.dot(h2, params["w3"].T, precision=precision) + params["b3"]


if __name__ == "__main__":
    # Shapes consistent with the module: args.state_dim=16, args.hidden_width=64,
    # args.is_tanh=1, args.is_orthogonal_init=True.  Batch of 256 states gives
    # a single 256-lane step on v5e/v6e and two 128-lane steps on dual-TC v7x.
    B, STATE_DIM, HIDDEN = 256, 16, 64

    key = jax.random.PRNGKey(0)
    k_param, k_s = jax.random.split(key)
    params = init_critic_params(k_param, STATE_DIM, HIDDEN)
    s = jax.random.normal(k_s, (B, STATE_DIM), dtype=jnp.float32)

    v = critic_forward(s, params, is_tanh=True)
    v = jax.block_until_ready(v)

    v_ref = critic_ref(s, params, is_tanh=True)
    assert v.shape == (B, 1)
    assert jnp.allclose(v, v_ref, atol=1e-5, rtol=1e-4), "mismatch vs reference"

    print("KERNEL_OK")
</pallas_src>

<mosaic_0001>
module attributes {stable_mosaic.version = 11 : i64} {
  func.func @_critic_kernel(%arg0: i32, %arg1: memref<16x256xf32, #tpu.memory_space<vmem>>, %arg2: memref<64x16xf32, #tpu.memory_space<vmem>>, %arg3: memref<64x1xf32, #tpu.memory_space<vmem>>, %arg4: memref<64x64xf32, #tpu.memory_space<vmem>>, %arg5: memref<64x1xf32, #tpu.memory_space<vmem>>, %arg6: memref<1x64xf32, #tpu.memory_space<vmem>>, %arg7: memref<1x1xf32, #tpu.memory_space<smem>>, %arg8: memref<1x256xf32, #tpu.memory_space<vmem>>) attributes {dimension_semantics = [#tpu.dimension_semantics<parallel>], iteration_bounds = array<i64: 1>, scalar_prefetch = 0 : i64, scratch_operands = 0 : i64, tpu.core_type = #tpu.core_type<tc>, window_params = [{transform_indices = @transform_0, window_bounds = array<i64: 16, 256>}, {pipeline_mode = #tpu.pipeline_mode<synchronous>, transform_indices = @transform_1, window_bounds = array<i64: 64, 16>}, {pipeline_mode = #tpu.pipeline_mode<synchronous>, transform_indices = @transform_2, window_bounds = array<i64: 64, 1>}, {pipeline_mode = #tpu.pipeline_mode<synchronous>, transform_indices = @transform_3, window_bounds = array<i64: 64, 64>}, {pipeline_mode = #tpu.pipeline_mode<synchronous>, transform_indices = @transform_4, window_bounds = array<i64: 64, 1>}, {pipeline_mode = #tpu.pipeline_mode<synchronous>, transform_indices = @transform_5, window_bounds = array<i64: 1, 64>}, {transform_indices = @transform_6, window_bounds = array<i64: 1, 1>}, {transform_indices = @transform_7, window_bounds = array<i64: 1, 256>}]} {
    %c0 = arith.constant 0 : index
    %c0_0 = arith.constant 0 : index
    %0 = vector.load %arg1[%c0, %c0_0] : memref<16x256xf32, #tpu.memory_space<vmem>>, vector<16x256xf32>
    %c0_1 = arith.constant 0 : index
    %c0_2 = arith.constant 0 : index
    %1 = vector.load %arg2[%c0_1, %c0_2] : memref<64x16xf32, #tpu.memory_space<vmem>>, vector<64x16xf32>
    %cst = arith.constant dense<0.000000e+00> : vector<64x256xf32>
    %2 = tpu.matmul %1, %0, %cst {dimension_numbers = #tpu.dot_dimension_numbers<[1], [0], [0], [1], [0, 0, 1, 1], [], []>, precision = #tpu.contract_precision<fp32>} : vector<64x16xf32>, vector<16x256xf32>, vector<64x256xf32> -> vector<64x256xf32>
    %c0_3 = arith.constant 0 : index
    %c0_4 = arith.constant 0 : index
    %3 = vector.load %arg3[%c0_3, %c0_4] : memref<64x1xf32, #tpu.memory_space<vmem>>, vector<64x1xf32>
    %4 = vector.broadcast %3 : vector<64x1xf32> to vector<64x256xf32>
    %5 = arith.addf %2, %4 : vector<64x256xf32>
    %6 = math.tanh %5 : vector<64x256xf32>
    %c0_5 = arith.constant 0 : index
    %c0_6 = arith.constant 0 : index
    %7 = vector.load %arg4[%c0_5, %c0_6] : memref<64x64xf32, #tpu.memory_space<vmem>>, vector<64x64xf32>
    %cst_7 = arith.constant dense<0.000000e+00> : vector<64x256xf32>
    %8 = tpu.matmul %7, %6, %cst_7 {dimension_numbers = #tpu.dot_dimension_numbers<[1], [0], [0], [1], [0, 0, 1, 1], [], []>, precision = #tpu.contract_precision<fp32>} : vector<64x64xf32>, vector<64x256xf32>, vector<64x256xf32> -> vector<64x256xf32>
    %c0_8 = arith.constant 0 : index
    %c0_9 = arith.constant 0 : index
    %9 = vector.load %arg5[%c0_8, %c0_9] : memref<64x1xf32, #tpu.memory_space<vmem>>, vector<64x1xf32>
    %10 = vector.broadcast %9 : vector<64x1xf32> to vector<64x256xf32>
    %11 = arith.addf %8, %10 : vector<64x256xf32>
    %12 = math.tanh %11 : vector<64x256xf32>
    %c0_10 = arith.constant 0 : index
    %c0_11 = arith.constant 0 : index
    %13 = vector.load %arg6[%c0_10, %c0_11] : memref<1x64xf32, #tpu.memory_space<vmem>>, vector<1x64xf32>
    %cst_12 = arith.constant dense<0.000000e+00> : vector<1x256xf32>
    %14 = tpu.matmul %13, %12, %cst_12 {dimension_numbers = #tpu.dot_dimension_numbers<[1], [0], [0], [1], [0, 0, 1, 1], [], []>, precision = #tpu.contract_precision<fp32>} : vector<1x64xf32>, vector<64x256xf32>, vector<1x256xf32> -> vector<1x256xf32>
    %c0_13 = arith.constant 0 : index
    %c0_14 = arith.constant 0 : index
    %15 = memref.load %arg7[%c0_13, %c0_14] : memref<1x1xf32, #tpu.memory_space<smem>>
    %16 = vector.broadcast %15 : f32 to vector<1x256xf32>
    %17 = arith.addf %14, %16 : vector<1x256xf32>
    %c0_15 = arith.constant 0 : index
    %c0_16 = arith.constant 0 : index
    %18 = vector.load %arg8[%c0_15, %c0_16] : memref<1x256xf32, #tpu.memory_space<vmem>>, vector<1x256xf32>
    tpu.vector_store %arg8[%c0_15, %c0_16], %17 {strides = array<i32>} : memref<1x256xf32, #tpu.memory_space<vmem>>, vector<1x256xf32>,
    return
  }
  func.func @transform_0(%arg0: i32) -> (i32, i32) {
    %c0_i32 = arith.constant 0 : i32
    %c0_i32_0 = arith.constant 0 : i32
    return %c0_i32, %arg0 : i32, i32
  }
  func.func @transform_1(%arg0: i32) -> (i32, i32) {
    %c0_i32 = arith.constant 0 : i32
    %c0_i32_0 = arith.constant 0 : i32
    %c0_i32_1 = arith.constant 0 : i32
    return %c0_i32, %c0_i32_0 : i32, i32
  }
  func.func @transform_2(%arg0: i32) -> (i32, i32) {
    %c0_i32 = arith.constant 0 : i32
    %c0_i32_0 = arith.constant 0 : i32
    %c0_i32_1 = arith.constant 0 : i32
    return %c0_i32, %c0_i32_0 : i32, i32
  }
  func.func @transform_3(%arg0: i32) -> (i32, i32) {
    %c0_i32 = arith.constant 0 : i32
    %c0_i32_0 = arith.constant 0 : i32
    %c0_i32_1 = arith.constant 0 : i32
    return %c0_i32, %c0_i32_0 : i32, i32
  }
  func.func @transform_4(%arg0: i32) -> (i32, i32) {
    %c0_i32 = arith.constant 0 : i32
    %c0_i32_0 = arith.constant 0 : i32
    %c0_i32_1 = arith.constant 0 : i32
    return %c0_i32, %c0_i32_0 : i32, i32
  }
  func.func @transform_5(%arg0: i32) -> (i32, i32) {
    %c0_i32 = arith.constant 0 : i32
    %c0_i32_0 = arith.constant 0 : i32
    %c0_i32_1 = arith.constant 0 : i32
    return %c0_i32, %c0_i32_0 : i32, i32
  }
  func.func @transform_6(%arg0: i32) -> (i32, i32) {
    %c0_i32 = arith.constant 0 : i32
    %c0_i32_0 = arith.constant 0 : i32
    %c0_i32_1 = arith.constant 0 : i32
    return %c0_i32, %c0_i32_0 : i32, i32
  }
  func.func @transform_7(%arg0: i32) -> (i32, i32) {
    %c0_i32 = arith.constant 0 : i32
    %c0_i32_0 = arith.constant 0 : i32
    return %c0_i32, %arg0 : i32, i32
  }
}

module attributes {stable_mosaic.version = 11 : i64} {
  func.func @_critic_kernel(%arg0: i32, %arg1: memref<16x256xf32, #tpu.memory_space<vmem>>, %arg2: memref<64x16xf32, #tpu.memory_space<vmem>>, %arg3: memref<64x1xf32, #tpu.memory_space<vmem>>, %arg4: memref<64x64xf32, #tpu.memory_space<vmem>>, %arg5: memref<64x1xf32, #tpu.memory_space<vmem>>, %arg6: memref<1x64xf32, #tpu.memory_space<vmem>>, %arg7: memref<1x1xf32, #tpu.memory_space<smem>>, %arg8: memref<1x256xf32, #tpu.memory_space<vmem>>) attributes {dimension_semantics = [#tpu.dimension_semantics<parallel>], iteration_bounds = array<i64: 1>, scalar_prefetch = 0 : i64, scratch_operands = 0 : i64, tpu.core_type = #tpu.core_type<tc>, window_params = [{transform_indices = @transform_0, window_bounds = array<i64: 16, 256>}, {pipeline_mode = #tpu.pipeline_mode<synchronous>, transform_indices = @transform_1, window_bounds = array<i64: 64, 16>}, {pipeline_mode = #tpu.pipeline_mode<synchronous>, transform_indices = @transform_2, window_bounds = array<i64: 64, 1>}, {pipeline_mode = #tpu.pipeline_mode<synchronous>, transform_indices = @transform_3, window_bounds = array<i64: 64, 64>}, {pipeline_mode = #tpu.pipeline_mode<synchronous>, transform_indices = @transform_4, window_bounds = array<i64: 64, 1>}, {pipeline_mode = #tpu.pipeline_mode<synchronous>, transform_indices = @transform_5, window_bounds = array<i64: 1, 64>}, {transform_indices = @transform_6, window_bounds = array<i64: 1, 1>}, {transform_indices = @transform_7, window_bounds = array<i64: 1, 256>}]} {
    %c0 = arith.constant 0 : index
    %c0_0 = arith.constant 0 : index
    %0 = vector.load %arg1[%c0, %c0_0] : memref<16x256xf32, #tpu.memory_space<vmem>>, vector<16x256xf32>
    %c0_1 = arith.constant 0 : index
    %c0_2 = arith.constant 0 : index
    %1 = vector.load %arg2[%c0_1, %c0_2] : memref<64x16xf32, #tpu.memory_space<vmem>>, vector<64x16xf32>
    %cst = arith.constant dense<0.000000e+00> : vector<64x256xf32>
    %2 = tpu.matmul %1, %0, %cst {dimension_numbers = #tpu.dot_dimension_numbers<[1], [0], [0], [1], [0, 0, 1, 1], [], []>, precision = #tpu.contract_precision<fp32>} : vector<64x16xf32>, vector<16x256xf32>, vector<64x256xf32> -> vector<64x256xf32>
    %c0_3 = arith.constant 0 : index
    %c0_4 = arith.constant 0 : index
    %3 = vector.load %arg3[%c0_3, %c0_4] : memref<64x1xf32, #tpu.memory_space<vmem>>, vector<64x1xf32>
    %4 = vector.broadcast %3 : vector<64x1xf32> to vector<64x256xf32>
    %5 = arith.addf %2, %4 : vector<64x256xf32>
    %6 = math.tanh %5 : vector<64x256xf32>
    %c0_5 = arith.constant 0 : index
    %c0_6 = arith.constant 0 : index
    %7 = vector.load %arg4[%c0_5, %c0_6] : memref<64x64xf32, #tpu.memory_space<vmem>>, vector<64x64xf32>
    %cst_7 = arith.constant dense<0.000000e+00> : vector<64x256xf32>
    %8 = tpu.matmul %7, %6, %cst_7 {dimension_numbers = #tpu.dot_dimension_numbers<[1], [0], [0], [1], [0, 0, 1, 1], [], []>, precision = #tpu.contract_precision<fp32>} : vector<64x64xf32>, vector<64x256xf32>, vector<64x256xf32> -> vector<64x256xf32>
    %c0_8 = arith.constant 0 : index
    %c0_9 = arith.constant 0 : index
    %9 = vector.load %arg5[%c0_8, %c0_9] : memref<64x1xf32, #tpu.memory_space<vmem>>, vector<64x1xf32>
    %10 = vector.broadcast %9 : vector<64x1xf32> to vector<64x256xf32>
    %11 = arith.addf %8, %10 : vector<64x256xf32>
    %12 = math.tanh %11 : vector<64x256xf32>
    %c0_10 = arith.constant 0 : index
    %c0_11 = arith.constant 0 : index
    %13 = vector.load %arg6[%c0_10, %c0_11] : memref<1x64xf32, #tpu.memory_space<vmem>>, vector<1x64xf32>
    %cst_12 = arith.constant dense<0.000000e+00> : vector<1x256xf32>
    %14 = tpu.matmul %13, %12, %cst_12 {dimension_numbers = #tpu.dot_dimension_numbers<[1], [0], [0], [1], [0, 0, 1, 1], [], []>, precision = #tpu.contract_precision<fp32>} : vector<1x64xf32>, vector<64x256xf32>, vector<1x256xf32> -> vector<1x256xf32>
    %c0_13 = arith.constant 0 : index
    %c0_14 = arith.constant 0 : index
    %15 = memref.load %arg7[%c0_13, %c0_14] : memref<1x1xf32, #tpu.memory_space<smem>>
    %16 = vector.broadcast %15 : f32 to vector<1x256xf32>
    %17 = arith.addf %14, %16 : vector<1x256xf32>
    %c0_15 = arith.constant 0 : index
    %c0_16 = arith.constant 0 : index
    %18 = vector.load %arg8[%c0_15, %c0_16] : memref<1x256xf32, #tpu.memory_space<vmem>>, vector<1x256xf32>
    tpu.vector_store %arg8[%c0_15, %c0_16], %17 {strides = array<i32>} : memref<1x256xf32, #tpu.memory_space<vmem>>, vector<1x256xf32>,
    return
  }
  func.func @transform_0(%arg0: i32) -> (i32, i32) {
    %c0_i32 = arith.constant 0 : i32
    %c0_i32_0 = arith.constant 0 : i32
    return %c0_i32, %arg0 : i32, i32
  }
  func.func @transform_1(%arg0: i32) -> (i32, i32) {
    %c0_i32 = arith.constant 0 : i32
    %c0_i32_0 = arith.constant 0 : i32
    %c0_i32_1 = arith.constant 0 : i32
    return %c0_i32, %c0_i32_0 : i32, i32
  }
  func.func @transform_2(%arg0: i32) -> (i32, i32) {
    %c0_i32 = arith.constant 0 : i32
    %c0_i32_0 = arith.constant 0 : i32
    %c0_i32_1 = arith.constant 0 : i32
    return %c0_i32, %c0_i32_0 : i32, i32
  }
  func.func @transform_3(%arg0: i32) -> (i32, i32) {
    %c0_i32 = arith.constant 0 : i32
    %c0_i32_0 = arith.constant 0 : i32
    %c0_i32_1 = arith.constant 0 : i32
    return %c0_i32, %c0_i32_0 : i32, i32
  }
  func.func @transform_4(%arg0: i32) -> (i32, i32) {
    %c0_i32 = arith.constant 0 : i32
    %c0_i32_0 = arith.constant 0 : i32
    %c0_i32_1 = arith.constant 0 : i32
    return %c0_i32, %c0_i32_0 : i32, i32
  }
  func.func @transform_5(%arg0: i32) -> (i32, i32) {
    %c0_i32 = arith.constant 0 : i32
    %c0_i32_0 = arith.constant 0 : i32
    %c0_i32_1 = arith.constant 0 : i32
    return %c0_i32, %c0_i32_0 : i32, i32
  }
  func.func @transform_6(%arg0: i32) -> (i32, i32) {
    %c0_i32 = arith.constant 0 : i32
    %c0_i32_0 = arith.constant 0 : i32
    %c0_i32_1 = arith.constant 0 : i32
    return %c0_i32, %c0_i32_0 : i32, i32
  }
  func.func @transform_7(%arg0: i32) -> (i32, i32) {
    %c0_i32 = arith.constant 0 : i32
    %c0_i32_0 = arith.constant 0 : i32
    return %c0_i32, %arg0 : i32, i32
  }
}

</mosaic_0001>

<bundles_post_ra>
// kernel: tpu_custom_call.1
= control target key start
LH: loop header
LB: loop body
LE: loop exit
PB: predicated region body
PF: predicated region fallthrough
CT: control target
= control target key end

     0   :  { %v4216_v7 = vmov 0.0   ;;  %vm88_vm0 = vcmask 130048   ;;  %s4206_s0 = inlined_call_operand.vmem [shape: f32[16,256], index: 0, kind: input, shape index: {}]   ;;  %s4207_s1 = inlined_call_operand.vmem [shape: f32[64,16], index: 1, kind: input, shape index: {}]   ;;  %s4208_s2 = inlined_call_operand.vmem [shape: f32[64,1], index: 2, kind: input, shape index: {}]   ;;  %s4209_s3 = inlined_call_operand.vmem [shape: f32[64,64], index: 3, kind: input, shape index: {}]   ;;  %s4210_s4 = inlined_call_operand.vmem [shape: f32[64,1], index: 4, kind: input, shape index: {}]   ;;  %s4211_s5 = inlined_call_operand.vmem [shape: f32[1,64], index: 5, kind: input, shape index: {}]   ;;  %s4212_s6 = inlined_call_operand.<no memory space> [shape: f32[1,1], index: 6, kind: input, shape index: {}]   ;;  %s4213_s7 = inlined_call_operand.hbm [shape: f32[1,256], index: 7, kind: output, shape index: {}]  }
   0x1   :  { %v29_v0 = vld [vmem:[%s4206_s0 + $0x8] sm:$0xff]  ;;  %v31_v1 = vld [vmem:[%s4206_s0 + $0x18] sm:$0xff]  ;;  %v28_v2 = vld [vmem:[%s4206_s0] sm:$0xff]  ;;  %354 = vmatprep.mubr.f32.mxu0 %v4216_v7  ;;  %181 = vmatprep.mubr.f32.mxu1 %v4216_v7 }
   0x2   :  { %v113_v3 = vand.u32 4294901760, %v29_v0  ;;  %v117_v4 = vand.u32 4294901760, %v31_v1  ;;  %v30_v5 = vld [vmem:[%s4206_s0 + $0x10] sm:$0xff]  ;;  %v115_v6 = vand.u32 4294901760, %v28_v2  ;;  %v32_v12 = vld [vmem:[%s4207_s1] sm:$0xff]  ;;  %v33_v14 = vld [vmem:[%s4207_s1 + $0x8] sm:$0xff] }
   0x3   :  { %v119_v8 = vand.u32 4294901760, %v30_v5 }
   0x4   :  { %v3312_v9 = vsub.f32 %v29_v0, %v113_v3  ;;  %v3314_v10 = vsub.f32 %v31_v1, %v117_v4  ;;  %v277_v11 = vsub.f32 %v28_v2, %v115_v6 }
   0x5   :  { %v289_v13 = vsub.f32 %v30_v5, %v119_v8 }
   0x6   :  { %13 = vsyncpa [#allocation4], 0  ;;  %v272_v15 = vand.u32 4294901760, %v3312_v9  ;;  %v284_v16 = vand.u32 4294901760, %v3314_v10  ;;  %v278_v17 = vand.u32 4294901760, %v277_v11  ;;  %v90_v19 = vsel %vm88_vm0, %v32_v12, 0 }
   0x7   :  { %v290_v18 = vand.u32 4294901760, %v289_v13  ;;  %v93_v23 = vsel %vm88_vm0, %v33_v14, 0  ;;  %v34_v25 = vld [vmem:[%s4207_s1 + $0x10] sm:$0xff]  ;;  %v3335_v30 = vand.u32 4294901760, %v90_v19  ;;  %v2748_v33 = vpack.c.bf16 %v3314_v10, %v3312_v9  ;;  %v35_v37 = vld [vmem:[%s4207_s1 + $0x18] sm:$0xff]  ;;  %v36_v47 = vld [vmem:[%s4207_s1 + $0x20] sm:$0xff] }
   0x8   :  { %v273_v20 = vsub.f32 %v3312_v9, %v272_v15  ;;  %v285_v21 = vsub.f32 %v3314_v10, %v284_v16  ;;  %v279_v22 = vsub.f32 %v277_v11, %v278_v17  ;;  %v3337_v31 = vand.u32 4294901760, %v93_v23  ;;  %v37_v55 = vld [vmem:[%s4207_s1 + $0x28] sm:$0xff]  ;;  %v38_v62 = vld [vmem:[%s4207_s1 + $0x30] sm:$0xff]  ;;  %v39_v5 = vld [vmem:[%s4207_s1 + $0x38] sm:$0xff]  ;;  %s3257_s21 = smov [#allocation3]  }
   0x9   :  { %v291_v24 = vsub.f32 %v289_v13, %v290_v18  ;;  %v96_v34 = vsel %vm88_vm0, %v34_v25, 0  ;;  %v3343_v36 = vsub.f32 %v90_v19, %v3335_v30  ;;  %v3351_v39 = vpack.c.bf16 %v117_v4, %v113_v3  ;;  %v44_v9 = vld [vmem:[%s4208_s2 + $0x20] sm:$0xff]  ;;  %v45_v10 = vld [vmem:[%s4208_s2 + $0x28] sm:$0xff]  ;;  %s2732_s22 = sshll.u32 %s3257_s21, 4  ;;  %s2733_s22 = int_to_ptr.vmem [resolvable:$true] %s2732_s22 }
   0xa   :  { %v274_v26 = vand.u32 4294901760, %v273_v20  ;;  %v286_v27 = vand.u32 4294901760, %v285_v21  ;;  %v280_v28 = vand.u32 4294901760, %v279_v22  ;;  %v3349_v38 = vsub.f32 %v93_v23, %v3337_v31  ;;  %p3235_p1 = scmp.lt.s32.totalorder %s2733_s22, %s2733_s22 }
   0xb   :  { %v292_v29 = vand.u32 4294901760, %v291_v24  ;;  %v2750_v40 = vpack.c.bf16 %v289_v13, %v277_v11  ;;  %v3353_v41 = vpack.c.bf16 %v119_v8, %v115_v6  ;;  %v3355_v42 = vand.u32 4294901760, %v96_v34  ;;  %2741 = vmatprep.subr.bf16.mxu1 %v3351_v39 }
   0xc   :  { %v2744_v32 = vpack.c.bf16 %v286_v27, %v274_v26  ;;  %v184_v43 = vand.u32 4294901760, %v3343_v36  ;;  %v195_v44 = vand.u32 4294901760, %v3349_v38  ;;  %v3359_v45 = vpack.c.bf16 %v290_v18, %v278_v17 }
   0xd   :  { %v2746_v35 = vpack.c.bf16 %v292_v29, %v280_v28  ;;  %v99_v46 = vsel %vm88_vm0, %v35_v37, 0  ;;  %2743 = vmatpush1.bf16.msra.mxu1 %v3353_v41  ;;  %v3368_v48 = vsub.f32 %v96_v34, %v3355_v42  ;;  %v102_v54 = vsel %vm88_vm0, %v36_v47, 0  ;;  %v40_v29 = vld [vmem:[%s4208_s2] sm:$0xff]  ;;  %v43_v37 = vld [vmem:[%s4208_s2 + $0x18] sm:$0xff]  ;;  %v973_v47 = vld [vmem:[%s4210_s4 + $0x10] sm:$0xff] }
   0xe   :  { %2745 = vmatprep.subr.bf16.mxu0 %v2744_v32  ;;  %v185_v49 = vsub.f32 %v3343_v36, %v184_v43  ;;  %v196_v50 = vsub.f32 %v3349_v38, %v195_v44  ;;  %v3378_v51 = vand.u32 4294901760, %v99_v46  ;;  %v3395_v59 = vand.u32 4294901760, %v102_v54  ;;  %v42_v32 = vld [vmem:[%s4208_s2 + $0x10] sm:$0xff] }
   0xf   :  { %2747 = vmatpush1.bf16.msra.mxu0 %v2746_v35  ;;  %v206_v52 = vand.u32 4294901760, %v3368_v48  ;;  %v105_v61 = vsel %vm88_vm0, %v37_v55, 0  ;;  %v108_v4 = vsel %vm88_vm0, %v38_v62, 0  ;;  %v111_v14 = vsel %vm88_vm0, %v39_v5, 0  ;;  %v41_v35 = vld [vmem:[%s4208_s2 + $0x8] sm:$0xff]  ;;  %v978_v55 = vld [vmem:[%s4210_s4 + $0x38] sm:$0xff] }
  0x10   :  { %2749 = vmatprep.subr.bf16.mxu0 %v2748_v33  ;;  %v186_v53 = vand.u32 4294901760, %v185_v49  ;;  %v3387_v56 = vsub.f32 %v99_v46, %v3378_v51  ;;  %v197_v57 = vand.u32 4294901760, %v196_v50  ;;  %v3403_v63 = vsub.f32 %v102_v54, %v3395_v59  ;;  %v972_v46 = vld [vmem:[%s4210_s4 + $0x8] sm:$0xff]  ;;  %v974_v49 = vld [vmem:[%s4210_s4 + $0x18] sm:$0xff]  ;;  %v975_v50 = vld [vmem:[%s4210_s4 + $0x20] sm:$0xff] }
  0x11   :  { %v207_v58 = vsub.f32 %v3368_v48, %v206_v52  ;;  %v3411_v2 = vand.u32 4294901760, %v105_v61  ;;  %v3427_v12 = vand.u32 4294901760, %v108_v4  ;;  %v3440_v20 = vand.u32 4294901760, %v111_v14  ;;  %v977_v54 = vld [vmem:[%s4210_s4 + $0x30] sm:$0xff] }
  0x12   :  { %356 = vmatmul.mubr.f32.vlgmr.msra.gmra.mrb[0].mxu0 %v3335_v30  ;;  %187 = vmatmul.mubr.f32.vlgmr.msra.gmra.mrb[0].mxu1 %v186_v53  ;;  %v217_v60 = vand.u32 4294901760, %v3387_v56  ;;  %v228_v3 = vand.u32 4294901760, %v3403_v63  ;;  %v3255_v33 = vmov 0   ;;  %v2756_v34 = vpack.c.bf16 %v284_v16, %v272_v15  ;;  %v46_v15 = vld [vmem:[%s4208_s2 + $0x30] sm:$0xff]  ;;  %v47_v16 = vld [vmem:[%s4208_s2 + $0x38] sm:$0xff]  ;;  %v976_v53 = vld [vmem:[%s4210_s4 + $0x28] sm:$0xff] }
  0x13   :  { %361 = vmatprep.mubr.f32.mxu0 %v4216_v7  ;;  %2751 = vmatpush1.bf16.msra.mxu0 %v2750_v40  ;;  %v208_v0 = vand.u32 4294901760, %v207_v58  ;;  %v3419_v6 = vsub.f32 %v105_v61, %v3411_v2  ;;  %v3432_v17 = vsub.f32 %v108_v4, %v3427_v12  ;;  %v3444_v22 = vsub.f32 %v111_v14, %v3440_v20  ;;  %v971_v40 = vld [vmem:[%s4210_s4] sm:$0xff] }
  0x14   :  { %2753 = vmatprep.subr.bf16.mxu0 %v3351_v39  ;;  %192 = vmatprep.mubr.f32.mxu1 %v4216_v7  ;;  %v218_v1 = vsub.f32 %v3387_v56, %v217_v60  ;;  %v229_v11 = vsub.f32 %v3403_v63, %v228_v3  ;;  %vm1019_vm1 = vcmask 523264  }
  0x15   :  { %v239_v13 = vand.u32 4294901760, %v3419_v6  ;;  %v250_v21 = vand.u32 4294901760, %v3432_v17  ;;  %v261_v25 = vand.u32 4294901760, %v3444_v22  ;;  %3164 = vset.pattern.permute.xlu0 %v3255_v33  ;;  %3165 = vset.pattern.permute.xlu1 %v3255_v33 }
  0x16   :  { %363 = vmatmul.mubr.f32.gmra.mrb[2].mxu0 %v3337_v31  ;;  %198 = vmatmul.mubr.f32.gmra.mrb[2].mxu1 %v197_v57  ;;  %v219_v8 = vand.u32 4294901760, %v218_v1  ;;  %v230_v18 = vand.u32 4294901760, %v229_v11  ;;  %v964_v1 = vld [vmem:[%s4209_s3 + $0x8] sm:$0xff] }
  0x17   :  { %368 = vmatprep.mubr.f32.mxu0 %v4216_v7  ;;  %203 = vmatprep.mubr.f32.mxu1 %v4216_v7  ;;  %v240_v19 = vsub.f32 %v3419_v6, %v239_v13  ;;  %v251_v24 = vsub.f32 %v3432_v17, %v250_v21  ;;  %v262_v27 = vsub.f32 %v3444_v22, %v261_v25 }
  0x18   :  { %50 = vperm.xlu0 %3164, %v40_v29   ;;  %60 = vperm.xlu1 %3165, %v42_v32  }
  0x19   :  { %v241_v23 = vand.u32 4294901760, %v240_v19  ;;  %v252_v26 = vand.u32 4294901760, %v251_v24  ;;  %v263_v28 = vand.u32 4294901760, %v262_v27  ;;  %v965_v27 = vld [vmem:[%s4209_s3 + $0x10] sm:$0xff] }
  0x1a   :  { %370 = vmatmul.mubr.f32.gmra.mrb[4].mxu0 %v3355_v42  ;;  %209 = vmatmul.mubr.f32.gmra.mrb[4].mxu1 %v208_v0 }
  0x1b   :  { %375 = vmatprep.mubr.f32.mxu0 %v4216_v7  ;;  %214 = vmatprep.mubr.f32.mxu1 %v4216_v7 }
  0x1c   :  { %55 = vperm.xlu0 %3164, %v41_v35   ;;  %65 = vperm.xlu1 %3165, %v43_v37  }
  0x1e   :  { %377 = vmatmul.mubr.f32.gmra.mrb[6].mxu0 %v3378_v51  ;;  %220 = vmatmul.mubr.f32.gmra.mrb[6].mxu1 %v219_v8 }
  0x1f   :  { %382 = vmatprep.mubr.f32.mxu0 %v4216_v7  ;;  %225 = vmatprep.mubr.f32.mxu1 %v4216_v7 }
  0x20   :  { %70 = vperm.xlu0 %3164, %v44_v9   ;;  %75 = vperm.xlu1 %3165, %v45_v10   ;;  %v1027_v10 = vsel %vm1019_vm1, %v965_v27, 0 }
  0x22   :  { %384 = vmatmul.mubr.f32.gmra.mrb[8].mxu0 %v3395_v59  ;;  %231 = vmatmul.mubr.f32.gmra.mrb[8].mxu1 %v230_v18 }
  0x23   :  { %389 = vmatprep.mubr.f32.mxu0 %v4216_v7  ;;  %236 = vmatprep.mubr.f32.mxu1 %v4216_v7 }
  0x24   :  { %80 = vperm.xlu0 %3164, %v46_v15   ;;  %85 = vperm.xlu1 %3165, %v47_v16  }
  0x26   :  { %391 = vmatmul.mubr.f32.gmra.mrb[10].mxu0 %v3411_v2  ;;  %242 = vmatmul.mubr.f32.gmra.mrb[10].mxu1 %v241_v23 }
  0x27   :  { %396 = vmatprep.mubr.f32.mxu0 %v4216_v7  ;;  %247 = vmatprep.mubr.f32.mxu1 %v4216_v7 }
  0x28   :  { %981 = vperm.xlu0 %3164, %v971_v40   ;;  %986 = vperm.xlu1 %3165, %v972_v46  }
  0x2a   :  { %398 = vmatmul.mubr.f32.gmra.mrb[12].mxu0 %v3427_v12  ;;  %253 = vmatmul.mubr.f32.gmra.mrb[12].mxu1 %v252_v26 }
  0x2b   :  { %403 = vmatprep.mubr.f32.mxu0 %v4216_v7  ;;  %258 = vmatprep.mubr.f32.mxu1 %v4216_v7 }
  0x2c   :  { %991 = vperm.xlu0 %3164, %v973_v47   ;;  %996 = vperm.xlu1 %3165, %v974_v49  }
  0x2e   :  { %405 = vmatmul.mubr.f32.gmra.mrb[14].mxu0 %v3440_v20  ;;  %264 = vmatmul.mubr.f32.gmra.mrb[14].mxu1 %v263_v28 }
  0x2f   :  { %483 = vmatprep.mubr.f32.mxu0 %v4216_v7  ;;  %1124 = vmatprep.mubr.f32.mxu1 %v4216_v7 }
  0x30   :  { %1001 = vperm.xlu0 %3164, %v975_v50   ;;  %1006 = vperm.xlu1 %3165, %v976_v53  }
  0x32   :  { %486 = vmatmul.mubr.f32.vlgmr.msra.gmra.mrb[0].mxu0 %v3343_v36 }
  0x33   :  { %491 = vmatprep.mubr.f32.mxu0 %v4216_v7  ;;  %2755 = vmatpush1.bf16.msra.mxu0 %v3353_v41 }
  0x34   :  { %2757 = vmatprep.subr.bf16.mxu0 %v2756_v34  ;;  %1011 = vperm.xlu0 %3164, %v977_v54  }
  0x35   :  { %1016 = vperm.xlu1 %3165, %v978_v55  }
  0x36   :  { %494 = vmatmul.mubr.f32.gmra.mrb[2].mxu0 %v3349_v38 }
  0x37   :  { %499 = vmatprep.mubr.f32.mxu0 %v4216_v7 }
  0x3a   :  { %502 = vmatmul.mubr.f32.gmra.mrb[4].mxu0 %v3368_v48 }
  0x3b   :  { %507 = vmatprep.mubr.f32.mxu0 %v4216_v7 }
  0x3e   :  { %510 = vmatmul.mubr.f32.gmra.mrb[6].mxu0 %v3387_v56 }
  0x3f   :  { %515 = vmatprep.mubr.f32.mxu0 %v4216_v7 }
  0x42   :  { %518 = vmatmul.mubr.f32.gmra.mrb[8].mxu0 %v3403_v63 }
  0x43   :  { %523 = vmatprep.mubr.f32.mxu0 %v4216_v7 }
  0x46   :  { %526 = vmatmul.mubr.f32.gmra.mrb[10].mxu0 %v3419_v6 }
  0x47   :  { %531 = vmatprep.mubr.f32.mxu0 %v4216_v7 }
  0x4a   :  { %534 = vmatmul.mubr.f32.gmra.mrb[12].mxu0 %v3432_v17 }
  0x4b   :  { %539 = vmatprep.mubr.f32.mxu0 %v4216_v7 }
  0x4e   :  { %542 = vmatmul.mubr.f32.gmra.mrb[14].mxu0 %v3444_v22 }
  0x4f   :  { %616 = vmatprep.mubr.f32.mxu0 %v4216_v7 }
  0x52   :  { %620 = vmatmul.mubr.f32.vlgmr.msra.gmra.mrb[0].mxu0 %v184_v43 }
  0x53   :  { %625 = vmatprep.mubr.f32.mxu0 %v4216_v7  ;;  %2759 = vmatpush1.bf16.msra.mxu0 %v3359_v45 }
  0x54   :  { %2761 = vmatprep.subr.bf16.mxu0 %v3351_v39 }
  0x56   :  { %629 = vmatmul.mubr.f32.gmra.mrb[2].mxu0 %v195_v44 }
  0x57   :  { %634 = vmatprep.mubr.f32.mxu0 %v4216_v7 }
  0x5a   :  { %638 = vmatmul.mubr.f32.gmra.mrb[4].mxu0 %v206_v52 }
  0x5b   :  { %643 = vmatprep.mubr.f32.mxu0 %v4216_v7 }
  0x5e   :  { %647 = vmatmul.mubr.f32.gmra.mrb[6].mxu0 %v217_v60  ;;  %v963_v60 = vld [vmem:[%s4209_s3] sm:$0xff] }
  0x5f   :  { %652 = vmatprep.mubr.f32.mxu0 %v4216_v7  ;;  %v1021_v0 = vsel %vm1019_vm1, %v963_v60, 0  ;;  %v966_v60 = vld [vmem:[%s4209_s3 + $0x18] sm:$0xff] }
  0x60   :  { %v3606_v8 = vand.u32 4294901760, %v1021_v0 }
  0x62   :  { %656 = vmatmul.mubr.f32.gmra.mrb[8].mxu0 %v228_v3 }
  0x63   :  { %661 = vmatprep.mubr.f32.mxu0 %v4216_v7 }
  0x66   :  { %665 = vmatmul.mubr.f32.gmra.mrb[10].mxu0 %v239_v13  ;;  %v1024_v13 = vsel %vm1019_vm1, %v964_v1, 0 }
  0x67   :  { %670 = vmatprep.mubr.f32.mxu0 %v4216_v7  ;;  %v3612_v22 = vand.u32 4294901760, %v1024_v13 }
  0x69   :  { %v3619_v35 = vsub.f32 %v1024_v13, %v3612_v22 }
  0x6a   :  { %674 = vmatmul.mubr.f32.gmra.mrb[12].mxu0 %v250_v21  ;;  %v3610_v21 = vsub.f32 %v1021_v0, %v3606_v8 }
  0x6b   :  { %679 = vmatprep.mubr.f32.mxu0 %v4216_v7  ;;  %v4214_v54 = vand.u32 4294901760, %v3619_v35 }
  0x6c   :  { %v4215_v34 = vand.u32 4294901760, %v3610_v21 }
  0x6e   :  { %683 = vmatmul.mubr.f32.gmra.mrb[14].mxu0 %v261_v25  ;;  %v3625_v53 = vsub.f32 %v3610_v21, %v4215_v34  ;;  %v967_v34 = vld [vmem:[%s4209_s3 + $0x20] sm:$0xff] }
  0x6f   :  { %765 = vmatprep.mubr.f32.mxu0 %v4216_v7 }
  0x72   :  { %767 = vmatmul.mubr.f32.vlgmr.msra.gmra.mrb[0].mxu0 %v3335_v30 }
  0x73   :  { %772 = vmatprep.mubr.f32.mxu0 %v4216_v7  ;;  %2763 = vmatpush1.bf16.msra.mxu0 %v3353_v41 }
  0x76   :  { %774 = vmatmul.mubr.f32.gmra.mrb[2].mxu0 %v3337_v31 }
  0x77   :  { %779 = vmatprep.mubr.f32.mxu0 %v4216_v7 }
  0x7a   :  { %781 = vmatmul.mubr.f32.gmra.mrb[4].mxu0 %v3355_v42 }
  0x7b   :  { %786 = vmatprep.mubr.f32.mxu0 %v4216_v7 }
  0x7e   :  { %788 = vmatmul.mubr.f32.gmra.mrb[6].mxu0 %v3378_v51 }
  0x7f   :  { %793 = vmatprep.mubr.f32.mxu0 %v4216_v7 }
  0x82   :  { %795 = vmatmul.mubr.f32.gmra.mrb[8].mxu0 %v3395_v59 }
  0x83   :  { %800 = vmatprep.mubr.f32.mxu0 %v4216_v7 }
  0x86   :  { %802 = vmatmul.mubr.f32.gmra.mrb[10].mxu0 %v3411_v2 }
  0x87   :  { %807 = vmatprep.mubr.f32.mxu0 %v4216_v7 }
  0x8a   :  { %809 = vmatmul.mubr.f32.gmra.mrb[12].mxu0 %v3427_v12 }
  0x8b   :  { %814 = vmatprep.mubr.f32.mxu0 %v4216_v7 }
  0x8e   :  { %816 = vmatmul.mubr.f32.gmra.mrb[14].mxu0 %v3440_v20 }
  0x8f   :  { %890 = vmatprep.mubr.f32.mxu0 %v4216_v7 }
  0x92   :  { %892 = vmatmul.mubr.f32.vlgmr.msra.gmra.mrb[0].mxu0 %v3335_v30 }
  0x93   :  { %897 = vmatprep.mubr.f32.mxu0 %v4216_v7 }
  0x96   :  { %899 = vmatmul.mubr.f32.gmra.mrb[2].mxu0 %v3337_v31 }
  0x97   :  { %904 = vmatprep.mubr.f32.mxu0 %v4216_v7  ;;  %v61_v61 = vpop.permute.xlu1 %60 }
  0x9a   :  { %906 = vmatmul.mubr.f32.gmra.mrb[4].mxu0 %v3355_v42 }
  0x9b   :  { %911 = vmatprep.mubr.f32.mxu0 %v4216_v7  ;;  %v66_v14 = vpop.permute.xlu1 %65 }
  0x9e   :  { %913 = vmatmul.mubr.f32.gmra.mrb[6].mxu0 %v3378_v51 }
  0x9f   :  { %918 = vmatprep.mubr.f32.mxu0 %v4216_v7  ;;  %v76_v28 = vpop.permute.xlu1 %75 }
  0xa2   :  { %920 = vmatmul.mubr.f32.gmra.mrb[8].mxu0 %v3395_v59  ;;  %v51_v59 = vpop.permute.xlu0 %50 }
  0xa3   :  { %925 = vmatprep.mubr.f32.mxu0 %v4216_v7 }
  0xa6   :  { %927 = vmatmul.mubr.f32.gmra.mrb[10].mxu0 %v3411_v2  ;;  %v56_v2 = vpop.permute.xlu0 %55 }
  0xa7   :  { %932 = vmatprep.mubr.f32.mxu0 %v4216_v7 }
  0xaa   :  { %934 = vmatmul.mubr.f32.gmra.mrb[12].mxu0 %v3427_v12  ;;  %v71_v25 = vpop.permute.xlu0 %70 }
  0xab   :  { %939 = vmatprep.mubr.f32.mxu0 %v4216_v7 }
  0xae   :  { %941 = vmatmul.mubr.f32.gmra.mrb[14].mxu0 %v3440_v20 }
  0xaf   :  { %2292 = vmatprep.mubr.f32.mxu0 %v4216_v7 }
  0xe5   :  { %v188_v30 = vpop.f32.mrb[0].mxu1 }
  0xe6   :  { %v190_v31 = vpop.f32.mrb[1].mxu1  ;;  %v189_v62 = vadd.f32 %v188_v30, %v51_v59  ;;  %v81_v30 = vpop.permute.xlu0 %80 }
  0xe7   :  { %v191_v63 = vadd.f32 %v190_v31, %v51_v59 }
  0xe9   :  { %v199_v36 = vpop.f32.mrb[2].mxu1 }
  0xea   :  { %v201_v38 = vpop.f32.mrb[3].mxu1  ;;  %v200_v4 = vadd.f32 %v199_v36, %v56_v2 }
  0xeb   :  { %v202_v11 = vadd.f32 %v201_v38, %v56_v2 }
  0xed   :  { %v210_v39 = vpop.f32.mrb[4].mxu1 }
  0xee   :  { %v212_v41 = vpop.f32.mrb[5].mxu1  ;;  %v211_v18 = vadd.f32 %v210_v39, %v61_v61  ;;  %v3628_v39 = vand.u32 4294901760, %v1027_v10 }
  0xef   :  { %v213_v23 = vadd.f32 %v212_v41, %v61_v61  ;;  %v86_v41 = vpop.permute.xlu1 %85 }
  0xf1   :  { %v221_v42 = vpop.f32.mrb[6].mxu1 }
  0xf2   :  { %v223_v43 = vpop.f32.mrb[7].mxu1  ;;  %v222_v29 = vadd.f32 %v221_v42, %v66_v14 }
  0xf3   :  { %v224_v37 = vadd.f32 %v223_v43, %v66_v14 }
  0xf5   :  { %v232_v44 = vpop.f32.mrb[8].mxu1 }
  0xf6   :  { %v234_v45 = vpop.f32.mrb[9].mxu1  ;;  %v233_v15 = vadd.f32 %v232_v44, %v71_v25 }
  0xf7   :  { %v235_v16 = vadd.f32 %v234_v45, %v71_v25 }
  0xf9   :  { %v243_v48 = vpop.f32.mrb[10].mxu1 }
  0xfa   :  { %v245_v51 = vpop.f32.mrb[11].mxu1  ;;  %v244_v47 = vadd.f32 %v243_v48, %v76_v28 }
  0xfb   :  { %v246_v31 = vadd.f32 %v245_v51, %v76_v28 }
  0xfd   :  { %v3591_v52 = vpop.f32.mrb[12].mxu1 }
  0xfe   :  { %v3593_v56 = vpop.f32.mrb[13].mxu1  ;;  %v255_v42 = vadd.f32 %v3591_v52, %v81_v30 }
  0xff   :  { %v257_v43 = vadd.f32 %v3593_v56, %v81_v30 }
 0x101   :  { %v3595_v57 = vpop.f32.mrb[14].mxu1 }
 0x102   :  { %v3597_v58 = vpop.f32.mrb[15].mxu1  ;;  %v3633_v45 = vadd.f32 %v3595_v57, %v86_v41  ;;  %v3649_v57 = vsub.f32 %v3619_v35, %v4214_v54 }
 0x103   :  { %v3636_v48 = vadd.f32 %v3597_v58, %v86_v41 }
 0x165   :  { %v893_v3 = vpop.f32.mrb[0].mxu0 }
 0x166   :  { %v2957_v5 = vadd.f32 %v893_v3, %v189_v62  ;;  %v895_v6 = vpop.f32.mrb[1].mxu0  ;;  %v3653_v3 = vsub.f32 %v1027_v10, %v3628_v39 }
 0x167   :  { %v2959_v12 = vadd.f32 %v895_v6, %v191_v63  ;;  %v3657_v6 = vsel %vm1019_vm1, %v966_v60, 0 }
 0x168   :  { %3166 = vtanh.f32 %v2957_v5 }
 0x169   :  { %3168 = vtanh.f32 %v2959_v12  ;;  %v900_v17 = vpop.f32.mrb[2].mxu0 }
 0x16a   :  { %v2961_v19 = vadd.f32 %v900_v17, %v200_v4  ;;  %v902_v20 = vpop.f32.mrb[3].mxu0 }
 0x16b   :  { %v2963_v24 = vadd.f32 %v902_v20, %v202_v11 }
 0x16c   :  { %3170 = vtanh.f32 %v2961_v19 }
 0x16d   :  { %3172 = vtanh.f32 %v2963_v24  ;;  %v907_v26 = vpop.f32.mrb[4].mxu0 }
 0x16e   :  { %v2965_v32 = vadd.f32 %v907_v26, %v211_v18  ;;  %v909_v33 = vpop.f32.mrb[5].mxu0 }
 0x16f   :  { %v2967_v9 = vadd.f32 %v909_v33, %v213_v23 }
 0x170   :  { %3174 = vtanh.f32 %v2965_v32 }
 0x171   :  { %3176 = vtanh.f32 %v2967_v9  ;;  %v914_v40 = vpop.f32.mrb[6].mxu0 }
 0x172   :  { %v3167_v46 = vpop.eup %3166  ;;  %v2969_v49 = vadd.f32 %v914_v40, %v222_v29  ;;  %v916_v50 = vpop.f32.mrb[7].mxu0 }
 0x173   :  { %v3169_v55 = vpop.eup %3168  ;;  %v2971_v36 = vadd.f32 %v916_v50, %v224_v37  ;;  %v1046_v38 = vand.u32 4294901760, %v3167_v46 }
 0x174   :  { %3178 = vtanh.f32 %v2969_v49  ;;  %v1044_v44 = vand.u32 4294901760, %v3169_v55 }
 0x175   :  { %3180 = vtanh.f32 %v2971_v36  ;;  %v921_v59 = vpop.f32.mrb[8].mxu0  ;;  %v3638_v51 = vsub.f32 %v3167_v46, %v1046_v38 }
 0x176   :  { %v3171_v61 = vpop.eup %3170  ;;  %v2973_v52 = vadd.f32 %v921_v59, %v233_v15  ;;  %v923_v62 = vpop.f32.mrb[9].mxu0  ;;  %v3643_v56 = vsub.f32 %v3169_v55, %v1044_v44 }
 0x177   :  { %v3173_v58 = vpop.eup %3172  ;;  %v2975_v0 = vadd.f32 %v923_v62, %v235_v16  ;;  %v1050_v1 = vand.u32 4294901760, %v3171_v61  ;;  %v1221_v2 = vand.u32 4294901760, %v3638_v51 }
 0x178   :  { %3182 = vtanh.f32 %v2973_v52  ;;  %v1048_v4 = vand.u32 4294901760, %v3173_v58  ;;  %v1215_v5 = vand.u32 4294901760, %v3643_v56 }
 0x179   :  { %3184 = vtanh.f32 %v2975_v0  ;;  %v928_v11 = vpop.f32.mrb[10].mxu0  ;;  %v3659_v12 = vpack.c.bf16 %v1050_v1, %v1046_v38  ;;  %v3661_v13 = vsub.f32 %v3171_v61, %v1050_v1  ;;  %v1222_v14 = vsub.f32 %v3638_v51, %v1221_v2 }
 0x17a   :  { %v3175_v17 = vpop.eup %3174  ;;  %v2977_v18 = vadd.f32 %v928_v11, %v244_v47  ;;  %v930_v19 = vpop.f32.mrb[11].mxu0  ;;  %v3666_v20 = vpack.c.bf16 %v1048_v4, %v1044_v44  ;;  %v3668_v23 = vsub.f32 %v3173_v58, %v1048_v4  ;;  %v1216_v24 = vsub.f32 %v3643_v56, %v1215_v5 }
 0x17b   :  { %v3177_v25 = vpop.eup %3176  ;;  %v2979_v26 = vadd.f32 %v930_v19, %v246_v31  ;;  %v1054_v27 = vand.u32 4294901760, %v3175_v17  ;;  %v1223_v28 = vand.u32 4294901760, %v1222_v14  ;;  %v1233_v29 = vand.u32 4294901760, %v3661_v13 }
 0x17c   :  { %3186 = vtanh.f32 %v2977_v18  ;;  %2765 = vmatprep.subr.bf16.mxu1 %v3666_v20  ;;  %v1052_v32 = vand.u32 4294901760, %v3177_v25  ;;  %v1217_v33 = vand.u32 4294901760, %v1216_v24  ;;  %v1227_v37 = vand.u32 4294901760, %v3668_v23 }
 0x17d   :  { %3188 = vtanh.f32 %v2979_v26  ;;  %v935_v9 = vpop.f32.mrb[12].mxu0  ;;  %2767 = vmatpush1.bf16.msra.mxu1 %v3659_v12  ;;  %v3677_v10 = vsub.f32 %v3175_v17, %v1054_v27  ;;  %v1234_v15 = vsub.f32 %v3661_v13, %v1233_v29 }
 0x17e   :  { %v3179_v40 = vpop.eup %3178  ;;  %v2981_v46 = vadd.f32 %v935_v9, %v255_v42  ;;  %v937_v47 = vpop.f32.mrb[13].mxu0  ;;  %v3684_v49 = vsub.f32 %v3177_v25, %v1052_v32  ;;  %v1228_v50 = vsub.f32 %v3668_v23, %v1227_v37 }
 0x17f   :  { %v3181_v30 = vpop.eup %3180  ;;  %v2983_v31 = vadd.f32 %v937_v47, %v257_v43  ;;  %v1058_v36 = vand.u32 4294901760, %v3179_v40  ;;  %v1235_v38 = vand.u32 4294901760, %v1234_v15  ;;  %v1245_v41 = vand.u32 4294901760, %v3677_v10 }
 0x180   :  { %3190 = vtanh.f32 %v2981_v46  ;;  %v1056_v44 = vand.u32 4294901760, %v3181_v30  ;;  %v1229_v59 = vand.u32 4294901760, %v1228_v50  ;;  %v1239_v60 = vand.u32 4294901760, %v3684_v49 }
 0x181   :  { %3192 = vtanh.f32 %v2983_v31  ;;  %v942_v42 = vpop.f32.mrb[14].mxu0  ;;  %v3691_v61 = vpack.c.bf16 %v1058_v36, %v1054_v27  ;;  %v3693_v52 = vsub.f32 %v3179_v40, %v1058_v36  ;;  %v3695_v62 = vpack.c.bf16 %v1235_v38, %v1223_v28 }
 0x182   :  { %v3183_v58 = vpop.eup %3182  ;;  %v2985_v43 = vadd.f32 %v942_v42, %v3633_v45  ;;  %v944_v0 = vpop.f32.mrb[15].mxu0  ;;  %v3698_v1 = vpack.c.bf16 %v1056_v44, %v1052_v32  ;;  %v3700_v4 = vsub.f32 %v3181_v30, %v1056_v44  ;;  %v3702_v11 = vpack.c.bf16 %v1229_v59, %v1217_v33 }
 0x183   :  { %v3185_v14 = vpop.eup %3184  ;;  %v2987_v17 = vadd.f32 %v944_v0, %v3636_v48  ;;  %v1062_v18 = vand.u32 4294901760, %v3183_v58  ;;  %v1240_v19 = vsub.f32 %v3684_v49, %v1239_v60  ;;  %v1246_v24 = vsub.f32 %v3677_v10, %v1245_v41 }
 0x184   :  { %3194 = vtanh.f32 %v2985_v43  ;;  %2769 = vmatprep.subr.bf16.mxu1 %v3698_v1  ;;  %v1060_v45 = vand.u32 4294901760, %v3185_v14  ;;  %v1251_v25 = vand.u32 4294901760, %v3700_v4  ;;  %v1257_v26 = vand.u32 4294901760, %v3693_v52 }
 0x185   :  { %3196 = vtanh.f32 %v2987_v17  ;;  %2771 = vmatpush1.bf16.msra.mxu1 %v3691_v61  ;;  %v3715_v48 = vsub.f32 %v3183_v58, %v1062_v18  ;;  %v1241_v27 = vand.u32 4294901760, %v1240_v19  ;;  %v1247_v28 = vand.u32 4294901760, %v1246_v24 }
 0x186   :  { %v3187_v32 = vpop.eup %3186  ;;  %v3717_v33 = vsub.f32 %v3185_v14, %v1060_v45  ;;  %v1252_v9 = vsub.f32 %v3700_v4, %v1251_v25  ;;  %v1258_v15 = vsub.f32 %v3693_v52, %v1257_v26  ;;  %v3728_v31 = vpack.c.bf16 %v1227_v37, %v1215_v5 }
 0x187   :  { %v3189_v46 = vpop.eup %3188  ;;  %v1066_v47 = vand.u32 4294901760, %v3187_v32  ;;  %v1269_v50 = vand.u32 4294901760, %v3715_v48  ;;  %v3740_v0 = vpack.c.bf16 %v1233_v29, %v1221_v2 }
 0x188   :  { %v1064_v36 = vand.u32 4294901760, %v3189_v46  ;;  %v1253_v38 = vand.u32 4294901760, %v1252_v9  ;;  %v1259_v44 = vand.u32 4294901760, %v1258_v15  ;;  %v1263_v59 = vand.u32 4294901760, %v3717_v33 }
 0x189   :  { %v3731_v42 = vpack.c.bf16 %v1066_v47, %v1062_v18  ;;  %v3733_v58 = vsub.f32 %v3187_v32, %v1066_v47  ;;  %v1270_v43 = vsub.f32 %v3715_v48, %v1269_v50  ;;  %v3753_v15 = vand.u32 4294901760, %v3657_v6 }
 0x18a   :  { %v3191_v14 = vpop.eup %3190  ;;  %v3742_v5 = vpack.c.bf16 %v1064_v36, %v1060_v45  ;;  %v3744_v37 = vsub.f32 %v3189_v46, %v1064_v36  ;;  %v3746_v17 = vpack.c.bf16 %v1253_v38, %v1241_v27  ;;  %v3748_v19 = vpack.c.bf16 %v1259_v44, %v1247_v28 }
 0x18b   :  { %v3193_v18 = vpop.eup %3192  ;;  %v1070_v24 = vand.u32 4294901760, %v3191_v14  ;;  %v1264_v32 = vsub.f32 %v3717_v33, %v1263_v59  ;;  %v1281_v9 = vand.u32 4294901760, %v3733_v58  ;;  %v1271_v46 = vand.u32 4294901760, %v1270_v43 }
 0x18c   :  { %2773 = vmatprep.subr.bf16.mxu1 %v3742_v5  ;;  %v1068_v2 = vand.u32 4294901760, %v3193_v18  ;;  %v1275_v29 = vand.u32 4294901760, %v3744_v37  ;;  %v3767_v36 = vpack.c.bf16 %v1251_v25, %v1239_v60 }
 0x18d   :  { %2775 = vmatpush1.bf16.msra.mxu1 %v3731_v42  ;;  %v3762_v28 = vsub.f32 %v3191_v14, %v1070_v24  ;;  %v1282_v47 = vsub.f32 %v3733_v58, %v1281_v9  ;;  %v3777_v14 = vpack.c.bf16 %v1257_v26, %v1245_v41  ;;  %v3782_v25 = vpack.c.bf16 %v1281_v9, %v1269_v50 }
 0x18e   :  { %v3195_v38 = vpop.eup %3194  ;;  %v3769_v44 = vsub.f32 %v3193_v18, %v1068_v2  ;;  %v1276_v54 = vsub.f32 %v3744_v37, %v1275_v29  ;;  %v3779_v43 = vpack.c.bf16 %v1275_v29, %v1263_v59  ;;  %v1265_v40 = vand.u32 4294901760, %v1264_v32 }
 0x18f   :  { %v3197_v27 = vpop.eup %3196  ;;  %v1074_v45 = vand.u32 4294901760, %v3195_v38  ;;  %v1283_v30 = vand.u32 4294901760, %v1282_v47  ;;  %v1293_v60 = vand.u32 4294901760, %v3762_v28  ;;  %4220 = vst [vmem:[#allocation7_spill] sm:$0xff] %v3782_v25  ;;  %v1033_v26 = vsel %vm1019_vm1, %v967_v34, 0 }
 0x190   :  { %4219 = vst [vmem:[#allocation6_spill] sm:$0xff] %v3779_v43  ;;  %v1072_v18 = vand.u32 4294901760, %v3197_v27  ;;  %v1277_v55 = vand.u32 4294901760, %v1276_v54  ;;  %v1287_v16 = vand.u32 4294901760, %v3769_v44  ;;  %v4218_v50 = vand.u32 4294901760, %v3653_v3  ;;  %v968_v54 = vld [vmem:[%s4209_s3 + $0x28] sm:$0xff] }
 0x191   :  { %v3785_v7 = vpack.c.bf16 %v1074_v45, %v1070_v24  ;;  %v3787_v63 = vsub.f32 %v3195_v38, %v1074_v45  ;;  %v2790_v41 = vpack.c.bf16 %v1283_v30, %v1271_v46  ;;  %v3800_v24 = vsub.f32 %v3657_v6, %v3753_v15 }
 0x192   :  { %v3790_v59 = vpack.c.bf16 %v1072_v18, %v1068_v2  ;;  %v3792_v29 = vsub.f32 %v3197_v27, %v1072_v18  ;;  %v2788_v47 = vpack.c.bf16 %v1277_v55, %v1265_v40  ;;  %v1294_v32 = vsub.f32 %v3762_v28, %v1293_v60  ;;  %v969_v18 = vld [vmem:[%s4209_s3 + $0x30] sm:$0xff] }
 0x193   :  { %v1305_v30 = vand.u32 4294901760, %v3787_v63  ;;  %v1288_v55 = vsub.f32 %v3769_v44, %v1287_v16  ;;  %v3809_v9 = vand.u32 4294901760, %v1033_v26  ;;  %v1036_v45 = vsel %vm1019_vm1, %v968_v54, 0 }
 0x194   :  { %2777 = vmatprep.subr.bf16.mxu1 %v3790_v59  ;;  %v1299_v40 = vand.u32 4294901760, %v3792_v29  ;;  %v1140_v46 = vand.u32 4294901760, %v3649_v57  ;;  %v1150_v2 = vsub.f32 %v3653_v3, %v4218_v50  ;;  %v1160_v54 = vand.u32 4294901760, %v3800_v24 }
 0x195   :  { %2779 = vmatpush1.bf16.msra.mxu1 %v3785_v7  ;;  %v1306_v6 = vsub.f32 %v3787_v63, %v1305_v30  ;;  %v3816_v27 = vpack.c.bf16 %v1305_v30, %v1293_v60  ;;  %v1295_v60 = vand.u32 4294901760, %v1294_v32  ;;  %v1289_v57 = vand.u32 4294901760, %v1288_v55 }
 0x196   :  { %2781 = vmatprep.subr.bf16.mxu1 %v3702_v11  ;;  %v1300_v38 = vsub.f32 %v3792_v29, %v1299_v40  ;;  %v3824_v34 = vpack.c.bf16 %v1299_v40, %v1287_v16  ;;  %v4222_v11 = vand.u32 4294901760, %v3625_v53  ;;  %v3833_v25 = vsub.f32 %v1033_v26, %v3809_v9  ;;  %v970_v53 = vld [vmem:[%s4209_s3 + $0x38] sm:$0xff] }
 0x197   :  { %4221 = vst [vmem:[#allocation8_spill] sm:$0xff] %v3816_v27  ;;  %v1307_v30 = vand.u32 4294901760, %v1306_v6  ;;  %v3835_v43 = vand.u32 4294901760, %v1036_v45  ;;  %v4223_v16 = vmov 0.0   ;;  %v1039_v50 = vsel %vm1019_vm1, %v969_v18, 0 }
 0x198   :  { %1130 = vmatmul.mubr.f32.vlgmr.msra.gmra.mrb[16].mxu1 %v4222_v11  ;;  %v1301_v27 = vand.u32 4294901760, %v1300_v38  ;;  %v1161_v26 = vsub.f32 %v3800_v24, %v1160_v54  ;;  %v1151_v55 = vand.u32 4294901760, %v1150_v2  ;;  %v3851_v38 = vand.u32 4294901760, %v1039_v50 }
 0x199   :  { %2783 = vmatpush1.bf16.msra.mxu1 %v3695_v62  ;;  %1135 = vmatprep.mubr.f32.mxu1 %v4223_v16  ;;  %v2794_v40 = vpack.c.bf16 %v1307_v30, %v1295_v60  ;;  %v1171_v62 = vand.u32 4294901760, %v3833_v25  ;;  %v3849_v6 = vsub.f32 %v1036_v45, %v3835_v43 }
 0x19a   :  { %2785 = vmatprep.subr.bf16.mxu1 %v3746_v17  ;;  %v2792_v32 = vpack.c.bf16 %v1301_v27, %v1289_v57  ;;  %v1042_v17 = vsel %vm1019_vm1, %v970_v53, 0  ;;  %v1162_v27 = vand.u32 4294901760, %v1161_v26  ;;  %v3861_v45 = vsub.f32 %v1039_v50, %v3851_v38 }
 0x19b   :  { %v1172_v2 = vsub.f32 %v3833_v25, %v1171_v62  ;;  %v3863_v18 = vand.u32 4294901760, %v1042_v17  ;;  %v4226_v53 = vpack.c.bf16 %v3700_v4, %v3684_v49  ;;  %v4227_v26 = vpack.c.bf16 %v3693_v52, %v3677_v10  ;;  %v4234_v52 = vld [vmem:[#allocation6_spill] sm:$0xff] }
 0x19c   :  { %1141 = vmatmul.mubr.f32.gmra.mrb[18].mxu1 %v1140_v46  ;;  %v1182_v46 = vand.u32 4294901760, %v3849_v6  ;;  %v1193_v60 = vand.u32 4294901760, %v3861_v45  ;;  %v4231_v10 = vpack.c.bf16 %v3787_v63, %v3762_v28  ;;  %v4232_v63 = vand.u32 4294901760, %v3610_v21 }
 0x19d   :  { %2787 = vmatpush1.bf16.msra.mxu1 %v3748_v19  ;;  %1146 = vmatprep.mubr.f32.mxu1 %v4223_v16  ;;  %v1173_v19 = vand.u32 4294901760, %v1172_v2  ;;  %v3871_v30 = vsub.f32 %v1042_v17, %v3863_v18  ;;  %v4233_v49 = vand.u32 4294901760, %v3619_v35  ;;  %v4235_v4 = vand.u32 4294901760, %v3653_v3 }
 0x19e   :  { %2789 = vmatprep.subr.bf16.mxu1 %v2788_v47  ;;  %v1183_v47 = vsub.f32 %v3849_v6, %v1182_v46  ;;  %v1194_v11 = vsub.f32 %v3861_v45, %v1193_v60 }
 0x19f   :  { %v1204_v57 = vand.u32 4294901760, %v3871_v30 }
 0x1a0   :  { %1152 = vmatmul.mubr.f32.gmra.mrb[20].mxu1 %v1151_v55  ;;  %v1184_v50 = vand.u32 4294901760, %v1183_v47  ;;  %v4228_v55 = vpack.c.bf16 %v3744_v37, %v3717_v33 }
 0x1a1   :  { %2791 = vmatpush1.bf16.msra.mxu1 %v2790_v41  ;;  %1157 = vmatprep.mubr.f32.mxu1 %v4223_v16  ;;  %v4224_v41 = vpack.c.bf16 %v3668_v23, %v3643_v56  ;;  %v4225_v23 = vpack.c.bf16 %v3661_v13, %v3638_v51  ;;  %v4229_v51 = vpack.c.bf16 %v3733_v58, %v3715_v48 }
 0x1a2   :  { %2793 = vmatprep.subr.bf16.mxu1 %v2792_v32  ;;  %v1195_v32 = vand.u32 4294901760, %v1194_v11  ;;  %v4230_v13 = vpack.c.bf16 %v3792_v29, %v3769_v44 }
 0x1a4   :  { %1163 = vmatmul.mubr.f32.gmra.mrb[22].mxu1 %v1162_v27 }
 0x1a5   :  { %2795 = vmatpush1.bf16.msra.mxu1 %v2794_v40  ;;  %1168 = vmatprep.mubr.f32.mxu1 %v4223_v16  ;;  %v1205_v40 = vsub.f32 %v3871_v30, %v1204_v57 }
 0x1a6   :  { %2797 = vmatprep.subr.bf16.mxu1 %v4224_v41 }
 0x1a7   :  { %v1206_v56 = vand.u32 4294901760, %v1205_v40 }
 0x1a8   :  { %1174 = vmatmul.mubr.f32.gmra.mrb[24].mxu1 %v1173_v19 }
 0x1a9   :  { %1179 = vmatprep.mubr.f32.mxu1 %v4223_v16 }
 0x1ac   :  { %1185 = vmatmul.mubr.f32.gmra.mrb[26].mxu1 %v1184_v50 }
 0x1ad   :  { %1190 = vmatprep.mubr.f32.mxu1 %v4223_v16 }
 0x1b0   :  { %1196 = vmatmul.mubr.f32.gmra.mrb[28].mxu1 %v1195_v32 }
 0x1b1   :  { %1201 = vmatprep.mubr.f32.mxu1 %v4223_v16 }
 0x1b4   :  { %1207 = vmatmul.mubr.f32.gmra.mrb[30].mxu1 %v1206_v56 }
 0x1b5   :  { %1357 = vmatprep.mubr.f32.mxu1 %v4223_v16 }
 0x1b8   :  { %1359 = vmatmul.mubr.f32.vlgmr.msra.gmra.mrb[16].mxu1 %v3606_v8 }
 0x1b9   :  { %2799 = vmatpush1.bf16.msra.mxu1 %v4225_v23  ;;  %1364 = vmatprep.mubr.f32.mxu1 %v4223_v16 }
 0x1ba   :  { %2801 = vmatprep.subr.bf16.mxu1 %v4226_v53 }
 0x1bc   :  { %1366 = vmatmul.mubr.f32.gmra.mrb[18].mxu1 %v3612_v22 }
 0x1bd   :  { %2803 = vmatpush1.bf16.msra.mxu1 %v4227_v26  ;;  %1371 = vmatprep.mubr.f32.mxu1 %v4223_v16 }
 0x1be   :  { %2805 = vmatprep.subr.bf16.mxu1 %v4228_v55 }
 0x1c0   :  { %1373 = vmatmul.mubr.f32.gmra.mrb[20].mxu1 %v3628_v39 }
 0x1c1   :  { %2807 = vmatpush1.bf16.msra.mxu1 %v4229_v51  ;;  %1378 = vmatprep.mubr.f32.mxu1 %v4223_v16 }
 0x1c2   :  { %2809 = vmatprep.subr.bf16.mxu1 %v4230_v13 }
 0x1c4   :  { %1380 = vmatmul.mubr.f32.gmra.mrb[22].mxu1 %v3753_v15 }
 0x1c5   :  { %2811 = vmatpush1.bf16.msra.mxu1 %v4231_v10  ;;  %1385 = vmatprep.mubr.f32.mxu1 %v4223_v16 }
 0x1c6   :  { %2813 = vmatprep.subr.bf16.mxu1 %v3666_v20 }
 0x1c8   :  { %1387 = vmatmul.mubr.f32.gmra.mrb[24].mxu1 %v3809_v9 }
 0x1c9   :  { %1392 = vmatprep.mubr.f32.mxu1 %v4223_v16 }
 0x1cc   :  { %1394 = vmatmul.mubr.f32.gmra.mrb[26].mxu1 %v3835_v43 }
 0x1cd   :  { %1399 = vmatprep.mubr.f32.mxu1 %v4223_v16 }
 0x1d0   :  { %1401 = vmatmul.mubr.f32.gmra.mrb[28].mxu1 %v3851_v38 }
 0x1d1   :  { %1406 = vmatprep.mubr.f32.mxu1 %v4223_v16 }
 0x1d4   :  { %1408 = vmatmul.mubr.f32.gmra.mrb[30].mxu1 %v3863_v18 }
 0x1d5   :  { %1510 = vmatprep.mubr.f32.mxu1 %v4223_v16 }
 0x1d8   :  { %1513 = vmatmul.mubr.f32.vlgmr.msra.gmra.mrb[16].mxu1 %v3610_v21  ;;  %v4236_v21 = vld [vmem:[#allocation7_spill] sm:$0xff] }
 0x1d9   :  { %2815 = vmatpush1.bf16.msra.mxu1 %v3659_v12  ;;  %1518 = vmatprep.mubr.f32.mxu1 %v4223_v16 }
 0x1da   :  { %2817 = vmatprep.subr.bf16.mxu1 %v3698_v1 }
 0x1dc   :  { %1521 = vmatmul.mubr.f32.gmra.mrb[18].mxu1 %v3619_v35  ;;  %v4237_v35 = vld [vmem:[#allocation8_spill] sm:$0xff] }
 0x1dd   :  { %2819 = vmatpush1.bf16.msra.mxu1 %v3691_v61  ;;  %1526 = vmatprep.mubr.f32.mxu1 %v4223_v16 }
 0x1de   :  { %2821 = vmatprep.subr.bf16.mxu1 %v3742_v5 }
 0x1e0   :  { %1529 = vmatmul.mubr.f32.gmra.mrb[20].mxu1 %v3653_v3 }
 0x1e1   :  { %2823 = vmatpush1.bf16.msra.mxu1 %v3731_v42  ;;  %1534 = vmatprep.mubr.f32.mxu1 %v4223_v16 }
 0x1e2   :  { %2825 = vmatprep.subr.bf16.mxu1 %v3790_v59 }
 0x1e4   :  { %1537 = vmatmul.mubr.f32.gmra.mrb[22].mxu1 %v3800_v24 }
 0x1e5   :  { %2827 = vmatpush1.bf16.msra.mxu1 %v3785_v7  ;;  %1542 = vmatprep.mubr.f32.mxu1 %v4223_v16 }
 0x1e6   :  { %2829 = vmatprep.subr.bf16.mxu1 %v3728_v31 }
 0x1e8   :  { %1545 = vmatmul.mubr.f32.gmra.mrb[24].mxu1 %v3833_v25 }
 0x1e9   :  { %1550 = vmatprep.mubr.f32.mxu1 %v4223_v16 }
 0x1ec   :  { %1553 = vmatmul.mubr.f32.gmra.mrb[26].mxu1 %v3849_v6 }
 0x1ed   :  { %1558 = vmatprep.mubr.f32.mxu1 %v4223_v16 }
 0x1f0   :  { %1561 = vmatmul.mubr.f32.gmra.mrb[28].mxu1 %v3861_v45 }
 0x1f1   :  { %1566 = vmatprep.mubr.f32.mxu1 %v4223_v16 }
 0x1f4   :  { %1569 = vmatmul.mubr.f32.gmra.mrb[30].mxu1 %v3871_v30 }
 0x1f5   :  { %1655 = vmatprep.mubr.f32.mxu1 %v4223_v16 }
 0x1f8   :  { %1659 = vmatmul.mubr.f32.vlgmr.msra.gmra.mrb[16].mxu1 %v4232_v63 }
 0x1f9   :  { %2831 = vmatpush1.bf16.msra.mxu1 %v3740_v0  ;;  %1664 = vmatprep.mubr.f32.mxu1 %v4223_v16  ;;  %v2050_v0 = vld [vmem:[%s4211_s5] sm:$0x1] }
 0x1fa   :  { %2833 = vmatprep.subr.bf16.mxu1 %v3767_v36  ;;  %v2054_v28 = vsel %vm1019_vm1, %v2050_v0, 0 }
 0x1fb   :  { %v4025_v24 = vand.u32 4294901760, %v2054_v28 }
 0x1fc   :  { %1668 = vmatmul.mubr.f32.gmra.mrb[18].mxu1 %v4233_v49 }
 0x1fd   :  { %2835 = vmatpush1.bf16.msra.mxu1 %v3777_v14  ;;  %1673 = vmatprep.mubr.f32.mxu1 %v4223_v16  ;;  %v4032_v27 = vsub.f32 %v2054_v28, %v4025_v24 }
 0x1fe   :  { %2837 = vmatprep.subr.bf16.mxu1 %v4234_v52 }
 0x200   :  { %1677 = vmatmul.mubr.f32.gmra.mrb[20].mxu1 %v4235_v4 }
 0x201   :  { %2839 = vmatpush1.bf16.msra.mxu1 %v4236_v21  ;;  %1682 = vmatprep.mubr.f32.mxu1 %v4223_v16 }
 0x202   :  { %2841 = vmatprep.subr.bf16.mxu1 %v3824_v34 }
 0x204   :  { %1686 = vmatmul.mubr.f32.gmra.mrb[22].mxu1 %v1160_v54 }
 0x205   :  { %2843 = vmatpush1.bf16.msra.mxu1 %v4237_v35  ;;  %1691 = vmatprep.mubr.f32.mxu1 %v4223_v16 }
 0x206   :  { %2845 = vmatprep.subr.bf16.mxu1 %v3666_v20 }
 0x208   :  { %1695 = vmatmul.mubr.f32.gmra.mrb[24].mxu1 %v1171_v62 }
 0x209   :  { %1700 = vmatprep.mubr.f32.mxu1 %v4223_v16 }
 0x20c   :  { %1704 = vmatmul.mubr.f32.gmra.mrb[26].mxu1 %v1182_v46 }
 0x20d   :  { %1709 = vmatprep.mubr.f32.mxu1 %v4223_v16 }
 0x210   :  { %1713 = vmatmul.mubr.f32.gmra.mrb[28].mxu1 %v1193_v60  ;;  %v2139_v60 = vand.u32 4294901760, %v4032_v27 }
 0x211   :  { %1718 = vmatprep.mubr.f32.mxu1 %v4223_v16 }
 0x214   :  { %1722 = vmatmul.mubr.f32.gmra.mrb[30].mxu1 %v1204_v57 }
 0x215   :  { %1840 = vmatprep.mubr.f32.mxu1 %v4223_v16 }
 0x218   :  { %1842 = vmatmul.mubr.f32.vlgmr.msra.gmra.mrb[16].mxu1 %v3606_v8 }
 0x219   :  { %2847 = vmatpush1.bf16.msra.mxu1 %v3659_v12  ;;  %1847 = vmatprep.mubr.f32.mxu1 %v4223_v16  ;;  %v987_v12 = vpop.permute.xlu1 %986 }
 0x21a   :  { %2849 = vmatprep.subr.bf16.mxu1 %v3698_v1 }
 0x21c   :  { %1849 = vmatmul.mubr.f32.gmra.mrb[18].mxu1 %v3612_v22 }
 0x21d   :  { %2851 = vmatpush1.bf16.msra.mxu1 %v3691_v61  ;;  %1854 = vmatprep.mubr.f32.mxu1 %v4223_v16  ;;  %v997_v37 = vpop.permute.xlu1 %996 }
 0x21e   :  { %2853 = vmatprep.subr.bf16.mxu1 %v3742_v5 }
 0x220   :  { %1856 = vmatmul.mubr.f32.gmra.mrb[20].mxu1 %v3628_v39 }
 0x221   :  { %2855 = vmatpush1.bf16.msra.mxu1 %v3731_v42  ;;  %1861 = vmatprep.mubr.f32.mxu1 %v4223_v16  ;;  %v1007_v30 = vpop.permute.xlu1 %1006 }
 0x222   :  { %2857 = vmatprep.subr.bf16.mxu1 %v3790_v59 }
 0x224   :  { %1863 = vmatmul.mubr.f32.gmra.mrb[22].mxu1 %v3753_v15 }
 0x225   :  { %2859 = vmatpush1.bf16.msra.mxu1 %v3785_v7  ;;  %1868 = vmatprep.mubr.f32.mxu1 %v4223_v16  ;;  %v982_v7 = vpop.permute.xlu0 %981 }
 0x228   :  { %1870 = vmatmul.mubr.f32.gmra.mrb[24].mxu1 %v3809_v9 }
 0x229   :  { %1875 = vmatprep.mubr.f32.mxu1 %v4223_v16  ;;  %v992_v33 = vpop.permute.xlu0 %991 }
 0x22c   :  { %1877 = vmatmul.mubr.f32.gmra.mrb[26].mxu1 %v3835_v43 }
 0x22d   :  { %1882 = vmatprep.mubr.f32.mxu1 %v4223_v16  ;;  %v1002_v34 = vpop.permute.xlu0 %1001 }
 0x230   :  { %1884 = vmatmul.mubr.f32.gmra.mrb[28].mxu1 %v3851_v38 }
 0x231   :  { %1889 = vmatprep.mubr.f32.mxu1 %v4223_v16  ;;  %v1012_v21 = vpop.permute.xlu0 %1011 }
 0x234   :  { %1891 = vmatmul.mubr.f32.gmra.mrb[30].mxu1 %v3863_v18 }
 0x235   :  { %1977 = vmatprep.mubr.f32.mxu1 %v4223_v16 }
 0x238   :  { %1979 = vmatmul.mubr.f32.vlgmr.msra.gmra.mrb[16].mxu1 %v3606_v8 }
 0x239   :  { %1984 = vmatprep.mubr.f32.mxu1 %v4223_v16 }
 0x23c   :  { %1986 = vmatmul.mubr.f32.gmra.mrb[18].mxu1 %v3612_v22 }
 0x23d   :  { %1991 = vmatprep.mubr.f32.mxu1 %v4223_v16 }
 0x240   :  { %1993 = vmatmul.mubr.f32.gmra.mrb[20].mxu1 %v3628_v39 }
 0x241   :  { %1998 = vmatprep.mubr.f32.mxu1 %v4223_v16 }
 0x244   :  { %2000 = vmatmul.mubr.f32.gmra.mrb[22].mxu1 %v3753_v15 }
 0x245   :  { %2005 = vmatprep.mubr.f32.mxu1 %v4223_v16 }
 0x248   :  { %2007 = vmatmul.mubr.f32.gmra.mrb[24].mxu1 %v3809_v9 }
 0x249   :  { %2012 = vmatprep.mubr.f32.mxu1 %v4223_v16 }
 0x24c   :  { %2014 = vmatmul.mubr.f32.gmra.mrb[26].mxu1 %v3835_v43 }
 0x24d   :  { %2019 = vmatprep.mubr.f32.mxu1 %v4223_v16 }
 0x250   :  { %2021 = vmatmul.mubr.f32.gmra.mrb[28].mxu1 %v3851_v38 }
 0x251   :  { %2026 = vmatprep.mubr.f32.mxu1 %v4223_v16 }
 0x254   :  { %2028 = vmatmul.mubr.f32.gmra.mrb[30].mxu1 %v3863_v18 }
 0x255   :  { %2136 = vmatprep.mubr.f32.mxu1 %v4223_v16 }
 0x30b   :  { %v1980_v8 = vpop.f32.mrb[16].mxu1 }
 0x30c   :  { %v2988_v22 = vadd.f32 %v1980_v8, %v982_v7  ;;  %v1982_v39 = vpop.f32.mrb[17].mxu1 }
 0x30d   :  { %v2989_v3 = vadd.f32 %v1982_v39, %v982_v7 }
 0x30e   :  { %3198 = vtanh.f32 %v2988_v22 }
 0x30f   :  { %3200 = vtanh.f32 %v2989_v3  ;;  %v1987_v20 = vpop.f32.mrb[18].mxu1 }
 0x310   :  { %v2990_v61 = vadd.f32 %v1987_v20, %v987_v12  ;;  %v1989_v1 = vpop.f32.mrb[19].mxu1 }
 0x311   :  { %v2991_v48 = vadd.f32 %v1989_v1, %v987_v12 }
 0x312   :  { %3202 = vtanh.f32 %v2990_v61 }
 0x313   :  { %3204 = vtanh.f32 %v2991_v48  ;;  %v1994_v31 = vpop.f32.mrb[20].mxu1 }
 0x314   :  { %v2992_v42 = vadd.f32 %v1994_v31, %v992_v33  ;;  %v1996_v58 = vpop.f32.mrb[21].mxu1 }
 0x315   :  { %v2993_v5 = vadd.f32 %v1996_v58, %v992_v33 }
 0x316   :  { %3206 = vtanh.f32 %v2992_v42 }
 0x317   :  { %3208 = vtanh.f32 %v2993_v5  ;;  %v2001_v15 = vpop.f32.mrb[22].mxu1 }
 0x318   :  { %v3199_v36 = vpop.eup %3198  ;;  %v2994_v44 = vadd.f32 %v2001_v15, %v997_v37  ;;  %v2003_v14 = vpop.f32.mrb[23].mxu1 }
 0x319   :  { %v3201_v43 = vpop.eup %3200  ;;  %v2995_v25 = vadd.f32 %v2003_v14, %v997_v37  ;;  %v2058_v59 = vand.u32 4294901760, %v3199_v36  ;;  %v1017_v15 = vpop.permute.xlu1 %1016 }
 0x31a   :  { %3210 = vtanh.f32 %v2994_v44  ;;  %v2056_v29 = vand.u32 4294901760, %v3201_v43 }
 0x31b   :  { %3212 = vtanh.f32 %v2995_v25  ;;  %v2008_v9 = vpop.f32.mrb[24].mxu1  ;;  %v4027_v54 = vsub.f32 %v3199_v36, %v2058_v59 }
 0x31c   :  { %v3203_v62 = vpop.eup %3202  ;;  %v2996_v6 = vadd.f32 %v2008_v9, %v1002_v34  ;;  %v2010_v38 = vpop.f32.mrb[25].mxu1  ;;  %v4029_v17 = vsub.f32 %v3201_v43, %v2056_v29 }
 0x31d   :  { %v3205_v2 = vpop.eup %3204  ;;  %v2997_v46 = vadd.f32 %v2010_v38, %v1002_v34  ;;  %v2062_v45 = vand.u32 4294901760, %v3203_v62  ;;  %v2156_v18 = vand.u32 4294901760, %v4027_v54 }
 0x31e   :  { %3214 = vtanh.f32 %v2996_v6  ;;  %v2060_v19 = vand.u32 4294901760, %v3205_v2  ;;  %v2150_v47 = vand.u32 4294901760, %v4029_v17 }
 0x31f   :  { %3216 = vtanh.f32 %v2997_v46  ;;  %v2015_v41 = vpop.f32.mrb[26].mxu1  ;;  %v4037_v50 = vpack.c.bf16 %v2062_v45, %v2058_v59  ;;  %v4039_v11 = vsub.f32 %v3203_v62, %v2062_v45  ;;  %v2157_v57 = vsub.f32 %v4027_v54, %v2156_v18 }
 0x320   :  { %v3207_v32 = vpop.eup %3206  ;;  %v2998_v40 = vadd.f32 %v2015_v41, %v1007_v30  ;;  %v2017_v56 = vpop.f32.mrb[27].mxu1  ;;  %v4044_v23 = vpack.c.bf16 %v2060_v19, %v2056_v29  ;;  %v4046_v53 = vsub.f32 %v3205_v2, %v2060_v19  ;;  %v2151_v26 = vsub.f32 %v4029_v17, %v2150_v47 }
 0x321   :  { %v3209_v55 = vpop.eup %3208  ;;  %v2999_v51 = vadd.f32 %v2017_v56, %v1007_v30  ;;  %v2066_v13 = vand.u32 4294901760, %v3207_v32  ;;  %v2158_v10 = vand.u32 4294901760, %v2157_v57  ;;  %v2168_v63 = vand.u32 4294901760, %v4039_v11 }
 0x322   :  { %3218 = vtanh.f32 %v2998_v40  ;;  %2861 = vmatprep.subr.bf16.mxu1 %v4044_v23  ;;  %v2064_v49 = vand.u32 4294901760, %v3209_v55  ;;  %v2152_v52 = vand.u32 4294901760, %v2151_v26  ;;  %v2162_v4 = vand.u32 4294901760, %v4046_v53 }
 0x323   :  { %3220 = vtanh.f32 %v2999_v51  ;;  %v2022_v35 = vpop.f32.mrb[28].mxu1  ;;  %2863 = vmatpush1.bf16.msra.mxu1 %v4037_v50  ;;  %v4055_v7 = vsub.f32 %v3207_v32, %v2066_v13  ;;  %v2169_v8 = vsub.f32 %v4039_v11, %v2168_v63  ;;  %v2892_v22 = vpack.c.bf16 %v4046_v53, %v4029_v17 }
 0x324   :  { %v3211_v39 = vpop.eup %3210  ;;  %v3000_v3 = vadd.f32 %v2022_v35, %v1012_v21  ;;  %v2024_v12 = vpop.f32.mrb[29].mxu1  ;;  %v4062_v20 = vsub.f32 %v3209_v55, %v2064_v49  ;;  %v2163_v61 = vsub.f32 %v4046_v53, %v2162_v4  ;;  %v2894_v1 = vpack.c.bf16 %v4039_v11, %v4027_v54 }
 0x325   :  { %v3213_v48 = vpop.eup %3212  ;;  %v3001_v33 = vadd.f32 %v2024_v12, %v1012_v21  ;;  %v2070_v31 = vand.u32 4294901760, %v3211_v39  ;;  %v2170_v42 = vand.u32 4294901760, %v2169_v8  ;;  %v2180_v58 = vand.u32 4294901760, %v4055_v7 }
 0x326   :  { %3222 = vtanh.f32 %v3000_v3  ;;  %v2068_v0 = vand.u32 4294901760, %v3213_v48  ;;  %v2164_v5 = vand.u32 4294901760, %v2163_v61  ;;  %v2174_v37 = vand.u32 4294901760, %v4062_v20 }
 0x327   :  { %3224 = vtanh.f32 %v3001_v33  ;;  %v2029_v28 = vpop.f32.mrb[30].mxu1  ;;  %v4069_v36 = vpack.c.bf16 %v2070_v31, %v2066_v13  ;;  %v4071_v44 = vsub.f32 %v3211_v39, %v2070_v31  ;;  %v2878_v14 = vpack.c.bf16 %v2170_v42, %v2158_v10 }
 0x328   :  { %v3215_v43 = vpop.eup %3214  ;;  %v3002_v25 = vadd.f32 %v2029_v28, %v1017_v15  ;;  %v2031_v59 = vpop.f32.mrb[31].mxu1  ;;  %v4073_v29 = vpack.c.bf16 %v2068_v0, %v2064_v49  ;;  %v4075_v34 = vsub.f32 %v3213_v48, %v2068_v0  ;;  %v2876_v9 = vpack.c.bf16 %v2164_v5, %v2152_v52 }
 0x329   :  { %v3217_v62 = vpop.eup %3216  ;;  %v3003_v6 = vadd.f32 %v2031_v59, %v1017_v15  ;;  %v2175_v38 = vsub.f32 %v4062_v20, %v2174_v37  ;;  %v2074_v2 = vand.u32 4294901760, %v3215_v43  ;;  %v2181_v46 = vsub.f32 %v4055_v7, %v2180_v58 }
 0x32a   :  { %3226 = vtanh.f32 %v3002_v25  ;;  %2865 = vmatprep.subr.bf16.mxu1 %v4073_v29  ;;  %2877 = vmatprep.subr.bf16.mxu0 %v2876_v9  ;;  %v2072_v45 = vand.u32 4294901760, %v3217_v62  ;;  %v2186_v19 = vand.u32 4294901760, %v4075_v34  ;;  %v2192_v30 = vand.u32 4294901760, %v4071_v44 }
 0x32b   :  { %3228 = vtanh.f32 %v3003_v6  ;;  %2867 = vmatpush1.bf16.msra.mxu1 %v4069_v36  ;;  %2879 = vmatpush1.bf16.msra.mxu0 %v2878_v14  ;;  %v2176_v41 = vand.u32 4294901760, %v2175_v38  ;;  %v4087_v57 = vsub.f32 %v3215_v43, %v2074_v2  ;;  %v2182_v32 = vand.u32 4294901760, %v2181_v46 }
 0x32c   :  { %v3219_v40 = vpop.eup %3218  ;;  %v4089_v56 = vsub.f32 %v3217_v62, %v2072_v45  ;;  %v2187_v26 = vsub.f32 %v4075_v34, %v2186_v19  ;;  %v2193_v55 = vsub.f32 %v4071_v44, %v2192_v30  ;;  %v2896_v51 = vpack.c.bf16 %v4075_v34, %v4062_v20 }
 0x32d   :  { %v3221_v13 = vpop.eup %3220  ;;  %v2078_v10 = vand.u32 4294901760, %v3219_v40  ;;  %v2204_v49 = vand.u32 4294901760, %v4087_v57  ;;  %v2898_v52 = vpack.c.bf16 %v4071_v44, %v4055_v7  ;;  %v4100_v21 = vpack.c.bf16 %v2162_v4, %v2150_v47 }
 0x32e   :  { %v2076_v35 = vand.u32 4294901760, %v3221_v13  ;;  %v2188_v8 = vand.u32 4294901760, %v2187_v26  ;;  %v2194_v39 = vand.u32 4294901760, %v2193_v55  ;;  %v2198_v3 = vand.u32 4294901760, %v4089_v56 }
 0x32f   :  { %v4103_v12 = vpack.c.bf16 %v2078_v10, %v2074_v2  ;;  %v4105_v61 = vsub.f32 %v3219_v40, %v2078_v10  ;;  %v2205_v48 = vsub.f32 %v4087_v57, %v2204_v49  ;;  %v4112_v33 = vpack.c.bf16 %v2168_v63, %v2156_v18 }
 0x330   :  { %v3223_v31 = vpop.eup %3222  ;;  %v4114_v47 = vpack.c.bf16 %v2076_v35, %v2072_v45  ;;  %v4116_v4 = vsub.f32 %v3221_v13, %v2076_v35  ;;  %v2880_v42 = vpack.c.bf16 %v2188_v8, %v2176_v41  ;;  %v2882_v0 = vpack.c.bf16 %v2194_v39, %v2182_v32 }
 0x331   :  { %v3225_v5 = vpop.eup %3224  ;;  %v2199_v15 = vsub.f32 %v4089_v56, %v2198_v3  ;;  %v2082_v28 = vand.u32 4294901760, %v3223_v31  ;;  %v2216_v14 = vand.u32 4294901760, %v4105_v61  ;;  %v2140_v43 = vsub.f32 %v4032_v27, %v2139_v60 }
 0x332   :  { %2869 = vmatprep.subr.bf16.mxu1 %v4114_v47  ;;  %2881 = vmatprep.subr.bf16.mxu0 %v2880_v42  ;;  %v2080_v18 = vand.u32 4294901760, %v3225_v5  ;;  %v2210_v63 = vand.u32 4294901760, %v4116_v4  ;;  %v2900_v25 = vpack.c.bf16 %v4116_v4, %v4089_v56  ;;  %v2902_v59 = vpack.c.bf16 %v4105_v61, %v4087_v57 }
 0x333   :  { %2871 = vmatpush1.bf16.msra.mxu1 %v4103_v12  ;;  %2883 = vmatpush1.bf16.msra.mxu0 %v2882_v0  ;;  %v2227_v9 = vsub.f32 %v3223_v31, %v2082_v28  ;;  %v2206_v62 = vand.u32 4294901760, %v2205_v48  ;;  %v2217_v6 = vsub.f32 %v4105_v61, %v2216_v14  ;;  %v4133_v38 = vpack.c.bf16 %v2186_v19, %v2174_v37 }
 0x334   :  { %v3227_v2 = vpop.eup %3226  ;;  %v2221_v46 = vsub.f32 %v3225_v5, %v2080_v18  ;;  %v2211_v45 = vsub.f32 %v4116_v4, %v2210_v63  ;;  %v4138_v41 = vpack.c.bf16 %v2192_v30, %v2180_v58  ;;  %v4140_v57 = vpack.c.bf16 %v2210_v63, %v2198_v3 }
 0x335   :  { %v3229_v32 = vpop.eup %3228  ;;  %v2086_v40 = vand.u32 4294901760, %v3227_v2  ;;  %v2218_v56 = vand.u32 4294901760, %v2217_v6  ;;  %v2228_v26 = vand.u32 4294901760, %v2227_v9  ;;  %v2934_v55 = vpack.c.bf16 %v2216_v14, %v2204_v49 }
 0x336   :  { %v2084_v13 = vand.u32 4294901760, %v3229_v32  ;;  %v2200_v10 = vand.u32 4294901760, %v2199_v15  ;;  %v2212_v35 = vand.u32 4294901760, %v2211_v45  ;;  %v2222_v37 = vand.u32 4294901760, %v2221_v46 }
 0x337   :  { %v4142_v19 = vpack.c.bf16 %v2086_v40, %v2082_v28  ;;  %v2239_v8 = vsub.f32 %v3227_v2, %v2086_v40  ;;  %v2886_v39 = vpack.c.bf16 %v2218_v56, %v2206_v62  ;;  %v2229_v30 = vsub.f32 %v2227_v9, %v2228_v26 }
 0x338   :  { %v4144_v61 = vpack.c.bf16 %v2084_v13, %v2080_v18  ;;  %v2233_v48 = vsub.f32 %v3229_v32, %v2084_v13  ;;  %v2884_v58 = vpack.c.bf16 %v2212_v35, %v2200_v10  ;;  %v2223_v4 = vsub.f32 %v2221_v46, %v2222_v37 }
 0x339   :  { %v2240_v3 = vand.u32 4294901760, %v2239_v8  ;;  %v2906_v31 = vpack.c.bf16 %v2239_v8, %v2227_v9  ;;  %v2141_v0 = vand.u32 4294901760, %v2140_v43  ;;  %v2230_v18 = vand.u32 4294901760, %v2229_v30 }
 0x33a   :  { %2873 = vmatprep.subr.bf16.mxu1 %v4144_v61  ;;  %2885 = vmatprep.subr.bf16.mxu0 %v2884_v58  ;;  %v2234_v49 = vand.u32 4294901760, %v2233_v48  ;;  %v2904_v42 = vpack.c.bf16 %v2233_v48, %v2221_v46  ;;  %v2224_v62 = vand.u32 4294901760, %v2223_v4 }
 0x33b   :  { %2875 = vmatpush1.bf16.msra.mxu1 %v4142_v19  ;;  %2887 = vmatpush1.bf16.msra.mxu0 %v2886_v39  ;;  %v2241_v5 = vsub.f32 %v2239_v8, %v2240_v3  ;;  %v2938_v15 = vpack.c.bf16 %v2240_v3, %v2228_v26 }
 0x33c   :  { %v2235_v28 = vsub.f32 %v2233_v48, %v2234_v49  ;;  %v2936_v14 = vpack.c.bf16 %v2234_v49, %v2222_v37 }
 0x33d   :  { %v2242_v63 = vand.u32 4294901760, %v2241_v5 }
 0x33e   :  { %v2236_v6 = vand.u32 4294901760, %v2235_v28  ;;  %2142 = vmatmul.mubr.f32.vlgmr.msra.gmra.mrb[32].mxu1 %v2141_v0 }
 0x33f   :  { %v2890_v9 = vpack.c.bf16 %v2242_v63, %v2230_v18 }
 0x340   :  { %v2888_v2 = vpack.c.bf16 %v2236_v6, %v2224_v62 }
 0x342   :  { %2889 = vmatprep.subr.bf16.mxu0 %v2888_v2 }
 0x343   :  { %2891 = vmatpush1.bf16.msra.mxu0 %v2890_v9 }
 0x344   :  { %2893 = vmatprep.subr.bf16.mxu0 %v2892_v22 }
 0x346   :  { %2294 = vmatmul.mubr.f32.vlgmr.msra.gmra.mrb[16].mxu0 %v4025_v24 }
 0x347   :  { %2895 = vmatpush1.bf16.msra.mxu0 %v2894_v1  ;;  %2396 = vmatprep.mubr.f32.mxu0 %v4223_v16 }
 0x348   :  { %2897 = vmatprep.subr.bf16.mxu0 %v2896_v51 }
 0x34b   :  { %2899 = vmatpush1.bf16.msra.mxu0 %v2898_v52 }
 0x34c   :  { %2901 = vmatprep.subr.bf16.mxu0 %v2900_v25 }
 0x34f   :  { %2903 = vmatpush1.bf16.msra.mxu0 %v2902_v59 }
 0x350   :  { %2905 = vmatprep.subr.bf16.mxu0 %v2904_v42 }
 0x353   :  { %2907 = vmatpush1.bf16.msra.mxu0 %v2906_v31 }
 0x354   :  { %2909 = vmatprep.subr.bf16.mxu0 %v4044_v23 }
 0x356   :  { %2399 = vmatmul.mubr.f32.vlgmr.msra.gmra.mrb[16].mxu0 %v4032_v27  ;;  %v3256_v27 = vmov 1966171168  }
 0x357   :  { %2911 = vmatpush1.bf16.msra.mxu0 %v4037_v50  ;;  %2485 = vmatprep.mubr.f32.mxu0 %v4223_v16 }
 0x358   :  { %2913 = vmatprep.subr.bf16.mxu0 %v4073_v29 }
 0x35b   :  { %2915 = vmatpush1.bf16.msra.mxu0 %v4069_v36 }
 0x35c   :  { %2917 = vmatprep.subr.bf16.mxu0 %v4114_v47 }
 0x35f   :  { %2919 = vmatpush1.bf16.msra.mxu0 %v4103_v12 }
 0x360   :  { %2921 = vmatprep.subr.bf16.mxu0 %v4144_v61 }
 0x363   :  { %2923 = vmatpush1.bf16.msra.mxu0 %v4142_v19 }
 0x364   :  { %2925 = vmatprep.subr.bf16.mxu0 %v4100_v21 }
 0x366   :  { %2489 = vmatmul.mubr.f32.vlgmr.msra.gmra.mrb[16].mxu0 %v2139_v60  ;;  %v2707_v60 = vunpack.c.l.s4 %v3256_v27 }
 0x367   :  { %2927 = vmatpush1.bf16.msra.mxu0 %v4112_v33  ;;  %2607 = vmatprep.mubr.f32.mxu0 %v4223_v16 }
 0x368   :  { %2929 = vmatprep.subr.bf16.mxu0 %v4133_v38  ;;  %v2708_v53 = vunpack.c.0.s8 %v2707_v60 }
 0x36b   :  { %2931 = vmatpush1.bf16.msra.mxu0 %v4138_v41 }
 0x36c   :  { %2933 = vmatprep.subr.bf16.mxu0 %v4140_v57 }
 0x36f   :  { %2935 = vmatpush1.bf16.msra.mxu0 %v2934_v55 }
 0x370   :  { %2937 = vmatprep.subr.bf16.mxu0 %v2936_v14 }
 0x373   :  { %2939 = vmatpush1.bf16.msra.mxu0 %v2938_v15 }
 0x374   :  { %2941 = vmatprep.subr.bf16.mxu0 %v4044_v23 }
 0x376   :  { %2609 = vmatmul.mubr.f32.vlgmr.msra.gmra.mrb[16].mxu0 %v4025_v24 }
 0x377   :  { %2943 = vmatpush1.bf16.msra.mxu0 %v4037_v50  ;;  %2695 = vmatprep.mubr.f32.mxu0 %v4223_v16  ;;  %v2052_v16 = vstv %s4212_s6  ;;  %v2709_v50 = vlaneseq  ;;  %s3230_s6 = scalar_lea.vmem %s2733_s22, 32 }
 0x378   :  { %2945 = vmatprep.subr.bf16.mxu0 %v4073_v29  ;;  %p3231_p0 = scmp.ne.s32.totalorder %s2733_s22, %s3230_s6  ;;  %p3236_p2 = scmp.lt.s32.totalorder %s3230_s6, %s3230_s6 }
 0x379   :  { %v2710_v7 = vshrl.u32 %v2709_v50, 7  ;;  %vm2723_vm2 = vcmp.lt.s32.totalorder %v2709_v50, 256 }
 0x37a   :  { %p3237_p3 = por %p3236_p2, %p3235_p1 }
 0x37b   :  { %2947 = vmatpush1.bf16.msra.mxu0 %v4069_v36  ;;  %v2711_v44 = vsub.s32 %v2708_v53, %v2710_v7 }
 0x37c   :  { %2949 = vmatprep.subr.bf16.mxu0 %v4114_v47  ;;  %p3238_p4 = pnand %p3237_p3, %p3231_p0 }
 0x37f   :  { %2951 = vmatpush1.bf16.msra.mxu0 %v4103_v12 }
 0x380   :  { %2953 = vmatprep.subr.bf16.mxu0 %v4144_v61 }
 0x383   :  { %2955 = vmatpush1.bf16.msra.mxu0 %v4142_v19 }
 0x386   :  { %2697 = vmatmul.mubr.f32.vlgmr.msra.gmra.mrb[16].mxu0 %v4025_v24 }
 0x411   :  { %v2143_v54 = vpop.f32.mrb[32].mxu1 }
 0x412   :  { %v2145_v17 = vpop.f32.mrb[33].mxu1  ;;  %v2144_v11 = vadd.f32 %v2143_v54, %v2052_v16 }
 0x413   :  { %v2146_v23 = vadd.f32 %v2145_v17, %v2052_v16 }
 0x459   :  { %v2698_v22 = vpop.f32.mrb[16].mxu0 }
 0x45a   :  { %v3005_v20 = vadd.f32 %v2698_v22, %v2144_v11  ;;  %v2700_v1 = vpop.f32.mrb[17].mxu0 }
 0x45b   :  { %v3007_v36 = vadd.f32 %v2700_v1, %v2146_v23 }
 0x45d   :  { %v2705_v29 = vcombine.low %v3005_v20, %v3007_v36 }
 0x45f   :  { %v2712_v24 = vrot.slane %v2705_v29, %v2711_v44 }
 0x461   :  { %v2719_v34 = vrot.slane %v2712_v24, %v2711_v44 }
 0x463   :  { %2725 = vst.msk [vmem:[#allocation3] sm:$0x3] %vm2723_vm2, %v2719_v34 }
 0x464   :  { %3241 = shalt.err (!%p3238_p4)
}
 0x465   :  { %s3242_s24 = scalar_lea.hbm %s4213_s7, 32 }
 0x466   :  { %p3243_p5 = scmp.ne.s32.totalorder %s4213_s7, %s3242_s24  ;;  %p3246_p6 = scmp.lt.u32.totalorder %s3242_s24, %s4213_s7 }
 0x468   :  { %p3248_p7 = pnand %p3246_p6, %p3243_p5 }
 0x46a   :  { %3251 = shalt.err (!%p3248_p7)
}
 0x46b   :  { %2735 = dma.vmem_to_hbm [thread:$0]  %s2733_s22, 32, %s4213_s7, [#allocation4]  }
 0x46c   :  { %3252 = dma.done.wait [#allocation4], 32  }
 0x46d   :  { %3253 = vsyncadd [#allocation4], 4294967264 }
 0x46e   :  { %2739 = vsyncpa [#allocation4], 1 }

// kernel: tpu_custom_call.1
= control target key start
LH: loop header
LB: loop body
LE: loop exit
PB: predicated region body
PF: predicated region fallthrough
CT: control target
= control target key end

     0   :  { %v4216_v7 = vmov 0.0   ;;  %vm88_vm0 = vcmask 130048   ;;  %s4206_s0 = inlined_call_operand.vmem [shape: f32[16,256], index: 0, kind: input, shape index: {}]   ;;  %s4207_s1 = inlined_call_operand.vmem [shape: f32[64,16], index: 1, kind: input, shape index: {}]   ;;  %s4208_s2 = inlined_call_operand.vmem [shape: f32[64,1], index: 2, kind: input, shape index: {}]   ;;  %s4209_s3 = inlined_call_operand.vmem [shape: f32[64,64], index: 3, kind: input, shape index: {}]   ;;  %s4210_s4 = inlined_call_operand.vmem [shape: f32[64,1], index: 4, kind: input, shape index: {}]   ;;  %s4211_s5 = inlined_call_operand.vmem [shape: f32[1,64], index: 5, kind: input, shape index: {}]   ;;  %s4212_s6 = inlined_call_operand.<no memory space> [shape: f32[1,1], index: 6, kind: input, shape index: {}]   ;;  %s4213_s7 = inlined_call_operand.hbm [shape: f32[1,256], index: 7, kind: output, shape index: {}]  }
   0x1   :  { %v29_v0 = vld [vmem:[%s4206_s0 + $0x8] sm:$0xff]  ;;  %v31_v1 = vld [vmem:[%s4206_s0 + $0x18] sm:$0xff]  ;;  %v28_v2 = vld [vmem:[%s4206_s0] sm:$0xff]  ;;  %354 = vmatprep.mubr.f32.mxu0 %v4216_v7  ;;  %181 = vmatprep.mubr.f32.mxu1 %v4216_v7 }
   0x2   :  { %v113_v3 = vand.u32 4294901760, %v29_v0  ;;  %v117_v4 = vand.u32 4294901760, %v31_v1  ;;  %v30_v5 = vld [vmem:[%s4206_s0 + $0x10] sm:$0xff]  ;;  %v115_v6 = vand.u32 4294901760, %v28_v2  ;;  %v32_v12 = vld [vmem:[%s4207_s1] sm:$0xff]  ;;  %v33_v14 = vld [vmem:[%s4207_s1 + $0x8] sm:$0xff] }
   0x3   :  { %v119_v8 = vand.u32 4294901760, %v30_v5 }
   0x4   :  { %v3312_v9 = vsub.f32 %v29_v0, %v113_v3  ;;  %v3314_v10 = vsub.f32 %v31_v1, %v117_v4  ;;  %v277_v11 = vsub.f32 %v28_v2, %v115_v6 }
   0x5   :  { %v289_v13 = vsub.f32 %v30_v5, %v119_v8 }
   0x6   :  { %13 = vsyncpa [#allocation4], 0  ;;  %v272_v15 = vand.u32 4294901760, %v3312_v9  ;;  %v284_v16 = vand.u32 4294901760, %v3314_v10  ;;  %v278_v17 = vand.u32 4294901760, %v277_v11  ;;  %v90_v19 = vsel %vm88_vm0, %v32_v12, 0 }
   0x7   :  { %v290_v18 = vand.u32 4294901760, %v289_v13  ;;  %v93_v23 = vsel %vm88_vm0, %v33_v14, 0  ;;  %v34_v25 = vld [vmem:[%s4207_s1 + $0x10] sm:$0xff]  ;;  %v3335_v30 = vand.u32 4294901760, %v90_v19  ;;  %v2748_v33 = vpack.c.bf16 %v3314_v10, %v3312_v9  ;;  %v35_v37 = vld [vmem:[%s4207_s1 + $0x18] sm:$0xff]  ;;  %v36_v47 = vld [vmem:[%s4207_s1 + $0x20] sm:$0xff] }
   0x8   :  { %v273_v20 = vsub.f32 %v3312_v9, %v272_v15  ;;  %v285_v21 = vsub.f32 %v3314_v10, %v284_v16  ;;  %v279_v22 = vsub.f32 %v277_v11, %v278_v17  ;;  %v3337_v31 = vand.u32 4294901760, %v93_v23  ;;  %v37_v55 = vld [vmem:[%s4207_s1 + $0x28] sm:$0xff]  ;;  %v38_v62 = vld [vmem:[%s4207_s1 + $0x30] sm:$0xff]  ;;  %v39_v5 = vld [vmem:[%s4207_s1 + $0x38] sm:$0xff]  ;;  %s3257_s21 = smov [#allocation3]  }
   0x9   :  { %v291_v24 = vsub.f32 %v289_v13, %v290_v18  ;;  %v96_v34 = vsel %vm88_vm0, %v34_v25, 0  ;;  %v3343_v36 = vsub.f32 %v90_v19, %v3335_v30  ;;  %v3351_v39 = vpack.c.bf16 %v117_v4, %v113_v3  ;;  %v44_v9 = vld [vmem:[%s4208_s2 + $0x20] sm:$0xff]  ;;  %v45_v10 = vld [vmem:[%s4208_s2 + $0x28] sm:$0xff]  ;;  %s2732_s22 = sshll.u32 %s3257_s21, 4  ;;  %s2733_s22 = int_to_ptr.vmem [resolvable:$true] %s2732_s22 }
   0xa   :  { %v274_v26 = vand.u32 4294901760, %v273_v20  ;;  %v286_v27 = vand.u32 4294901760, %v285_v21  ;;  %v280_v28 = vand.u32 4294901760, %v279_v22  ;;  %v3349_v38 = vsub.f32 %v93_v23, %v3337_v31  ;;  %p3235_p1 = scmp.lt.s32.totalorder %s2733_s22, %s2733_s22 }
   0xb   :  { %v292_v29 = vand.u32 4294901760, %v291_v24  ;;  %v2750_v40 = vpack.c.bf16 %v289_v13, %v277_v11  ;;  %v3353_v41 = vpack.c.bf16 %v119_v8, %v115_v6  ;;  %v3355_v42 = vand.u32 4294901760, %v96_v34  ;;  %2741 = vmatprep.subr.bf16.mxu1 %v3351_v39 }
   0xc   :  { %v2744_v32 = vpack.c.bf16 %v286_v27, %v274_v26  ;;  %v184_v43 = vand.u32 4294901760, %v3343_v36  ;;  %v195_v44 = vand.u32 4294901760, %v3349_v38  ;;  %v3359_v45 = vpack.c.bf16 %v290_v18, %v278_v17 }
   0xd   :  { %v2746_v35 = vpack.c.bf16 %v292_v29, %v280_v28  ;;  %v99_v46 = vsel %vm88_vm0, %v35_v37, 0  ;;  %2743 = vmatpush1.bf16.msra.mxu1 %v3353_v41  ;;  %v3368_v48 = vsub.f32 %v96_v34, %v3355_v42  ;;  %v102_v54 = vsel %vm88_vm0, %v36_v47, 0  ;;  %v40_v29 = vld [vmem:[%s4208_s2] sm:$0xff]  ;;  %v43_v37 = vld [vmem:[%s4208_s2 + $0x18] sm:$0xff]  ;;  %v973_v47 = vld [vmem:[%s4210_s4 + $0x10] sm:$0xff] }
   0xe   :  { %2745 = vmatprep.subr.bf16.mxu0 %v2744_v32  ;;  %v185_v49 = vsub.f32 %v3343_v36, %v184_v43  ;;  %v196_v50 = vsub.f32 %v3349_v38, %v195_v44  ;;  %v3378_v51 = vand.u32 4294901760, %v99_v46  ;;  %v3395_v59 = vand.u32 4294901760, %v102_v54  ;;  %v42_v32 = vld [vmem:[%s4208_s2 + $0x10] sm:$0xff] }
   0xf   :  { %2747 = vmatpush1.bf16.msra.mxu0 %v2746_v35  ;;  %v206_v52 = vand.u32 4294901760, %v3368_v48  ;;  %v105_v61 = vsel %vm88_vm0, %v37_v55, 0  ;;  %v108_v4 = vsel %vm88_vm0, %v38_v62, 0  ;;  %v111_v14 = vsel %vm88_vm0, %v39_v5, 0  ;;  %v41_v35 = vld [vmem:[%s4208_s2 + $0x8] sm:$0xff]  ;;  %v978_v55 = vld [vmem:[%s4210_s4 + $0x38] sm:$0xff] }
  0x10   :  { %2749 = vmatprep.subr.bf16.mxu0 %v2748_v33  ;;  %v186_v53 = vand.u32 4294901760, %v185_v49  ;;  %v3387_v56 = vsub.f32 %v99_v46, %v3378_v51  ;;  %v197_v57 = vand.u32 4294901760, %v196_v50  ;;  %v3403_v63 = vsub.f32 %v102_v54, %v3395_v59  ;;  %v972_v46 = vld [vmem:[%s4210_s4 + $0x8] sm:$0xff]  ;;  %v974_v49 = vld [vmem:[%s4210_s4 + $0x18] sm:$0xff]  ;;  %v975_v50 = vld [vmem:[%s4210_s4 + $0x20] sm:$0xff] }
  0x11   :  { %v207_v58 = vsub.f32 %v3368_v48, %v206_v52  ;;  %v3411_v2 = vand.u32 4294901760, %v105_v61  ;;  %v3427_v12 = vand.u32 4294901760, %v108_v4  ;;  %v3440_v20 = vand.u32 4294901760, %v111_v14  ;;  %v977_v54 = vld [vmem:[%s4210_s4 + $0x30] sm:$0xff] }
  0x12   :  { %356 = vmatmul.mubr.f32.vlgmr.msra.gmra.mrb[0].mxu0 %v3335_v30  ;;  %187 = vmatmul.mubr.f32.vlgmr.msra.gmra.mrb[0].mxu1 %v186_v53  ;;  %v217_v60 = vand.u32 4294901760, %v3387_v56  ;;  %v228_v3 = vand.u32 4294901760, %v3403_v63  ;;  %v3255_v33 = vmov 0   ;;  %v2756_v34 = vpack.c.bf16 %v284_v16, %v272_v15  ;;  %v46_v15 = vld [vmem:[%s4208_s2 + $0x30] sm:$0xff]  ;;  %v47_v16 = vld [vmem:[%s4208_s2 + $0x38] sm:$0xff]  ;;  %v976_v53 = vld [vmem:[%s4210_s4 + $0x28] sm:$0xff] }
  0x13   :  { %361 = vmatprep.mubr.f32.mxu0 %v4216_v7  ;;  %2751 = vmatpush1.bf16.msra.mxu0 %v2750_v40  ;;  %v208_v0 = vand.u32 4294901760, %v207_v58  ;;  %v3419_v6 = vsub.f32 %v105_v61, %v3411_v2  ;;  %v3432_v17 = vsub.f32 %v108_v4, %v3427_v12  ;;  %v3444_v22 = vsub.f32 %v111_v14, %v3440_v20  ;;  %v971_v40 = vld [vmem:[%s4210_s4] sm:$0xff] }
  0x14   :  { %2753 = vmatprep.subr.bf16.mxu0 %v3351_v39  ;;  %192 = vmatprep.mubr.f32.mxu1 %v4216_v7  ;;  %v218_v1 = vsub.f32 %v3387_v56, %v217_v60  ;;  %v229_v11 = vsub.f32 %v3403_v63, %v228_v3  ;;  %vm1019_vm1 = vcmask 523264  }
  0x15   :  { %v239_v13 = vand.u32 4294901760, %v3419_v6  ;;  %v250_v21 = vand.u32 4294901760, %v3432_v17  ;;  %v261_v25 = vand.u32 4294901760, %v3444_v22  ;;  %3164 = vset.pattern.permute.xlu0 %v3255_v33  ;;  %3165 = vset.pattern.permute.xlu1 %v3255_v33 }
  0x16   :  { %363 = vmatmul.mubr.f32.gmra.mrb[2].mxu0 %v3337_v31  ;;  %198 = vmatmul.mubr.f32.gmra.mrb[2].mxu1 %v197_v57  ;;  %v219_v8 = vand.u32 4294901760, %v218_v1  ;;  %v230_v18 = vand.u32 4294901760, %v229_v11  ;;  %v964_v1 = vld [vmem:[%s4209_s3 + $0x8] sm:$0xff] }
  0x17   :  { %368 = vmatprep.mubr.f32.mxu0 %v4216_v7  ;;  %203 = vmatprep.mubr.f32.mxu1 %v4216_v7  ;;  %v240_v19 = vsub.f32 %v3419_v6, %v239_v13  ;;  %v251_v24 = vsub.f32 %v3432_v17, %v250_v21  ;;  %v262_v27 = vsub.f32 %v3444_v22, %v261_v25 }
  0x18   :  { %50 = vperm.xlu0 %3164, %v40_v29   ;;  %60 = vperm.xlu1 %3165, %v42_v32  }
  0x19   :  { %v241_v23 = vand.u32 4294901760, %v240_v19  ;;  %v252_v26 = vand.u32 4294901760, %v251_v24  ;;  %v263_v28 = vand.u32 4294901760, %v262_v27  ;;  %v965_v27 = vld [vmem:[%s4209_s3 + $0x10] sm:$0xff] }
  0x1a   :  { %370 = vmatmul.mubr.f32.gmra.mrb[4].mxu0 %v3355_v42  ;;  %209 = vmatmul.mubr.f32.gmra.mrb[4].mxu1 %v208_v0 }
  0x1b   :  { %375 = vmatprep.mubr.f32.mxu0 %v4216_v7  ;;  %214 = vmatprep.mubr.f32.mxu1 %v4216_v7 }
  0x1c   :  { %55 = vperm.xlu0 %3164, %v41_v35   ;;  %65 = vperm.xlu1 %3165, %v43_v37  }
  0x1e   :  { %377 = vmatmul.mubr.f32.gmra.mrb[6].mxu0 %v3378_v51  ;;  %220 = vmatmul.mubr.f32.gmra.mrb[6].mxu1 %v219_v8 }
  0x1f   :  { %382 = vmatprep.mubr.f32.mxu0 %v4216_v7  ;;  %225 = vmatprep.mubr.f32.mxu1 %v4216_v7 }
  0x20   :  { %70 = vperm.xlu0 %3164, %v44_v9   ;;  %75 = vperm.xlu1 %3165, %v45_v10   ;;  %v1027_v10 = vsel %vm1019_vm1, %v965_v27, 0 }
  0x22   :  { %384 = vmatmul.mubr.f32.gmra.mrb[8].mxu0 %v3395_v59  ;;  %231 = vmatmul.mubr.f32.gmra.mrb[8].mxu1 %v230_v18 }
  0x23   :  { %389 = vmatprep.mubr.f32.mxu0 %v4216_v7  ;;  %236 = vmatprep.mubr.f32.mxu1 %v4216_v7 }
  0x24   :  { %80 = vperm.xlu0 %3164, %v46_v15   ;;  %85 = vperm.xlu1 %3165, %v47_v16  }
  0x26   :  { %391 = vmatmul.mubr.f32.gmra.mrb[10].mxu0 %v3411_v2  ;;  %242 = vmatmul.mubr.f32.gmra.mrb[10].mxu1 %v241_v23 }
  0x27   :  { %396 = vmatprep.mubr.f32.mxu0 %v4216_v7  ;;  %247 = vmatprep.mubr.f32.mxu1 %v4216_v7 }
  0x28   :  { %981 = vperm.xlu0 %3164, %v971_v40   ;;  %986 = vperm.xlu1 %3165, %v972_v46  }
  0x2a   :  { %398 = vmatmul.mubr.f32.gmra.mrb[12].mxu0 %v3427_v12  ;;  %253 = vmatmul.mubr.f32.gmra.mrb[12].mxu1 %v252_v26 }
  0x2b   :  { %403 = vmatprep.mubr.f32.mxu0 %v4216_v7  ;;  %258 = vmatprep.mubr.f32.mxu1 %v4216_v7 }
  0x2c   :  { %991 = vperm.xlu0 %3164, %v973_v47   ;;  %996 = vperm.xlu1 %3165, %v974_v49  }
  0x2e   :  { %405 = vmatmul.mubr.f32.gmra.mrb[14].mxu0 %v3440_v20  ;;  %264 = vmatmul.mubr.f32.gmra.mrb[14].mxu1 %v263_v28 }
  0x2f   :  { %483 = vmatprep.mubr.f32.mxu0 %v4216_v7  ;;  %1124 = vmatprep.mubr.f32.mxu1 %v4216_v7 }
  0x30   :  { %1001 = vperm.xlu0 %3164, %v975_v50   ;;  %1006 = vperm.xlu1 %3165, %v976_v53  }
  0x32   :  { %486 = vmatmul.mubr.f32.vlgmr.msra.gmra.mrb[0].mxu0 %v3343_v36 }
  0x33   :  { %491 = vmatprep.mubr.f32.mxu0 %v4216_v7  ;;  %2755 = vmatpush1.bf16.msra.mxu0 %v3353_v41 }
  0x34   :  { %2757 = vmatprep.subr.bf16.mxu0 %v2756_v34  ;;  %1011 = vperm.xlu0 %3164, %v977_v54  }
  0x35   :  { %1016 = vperm.xlu1 %3165, %v978_v55  }
  0x36   :  { %494 = vmatmul.mubr.f32.gmra.mrb[2].mxu0 %v3349_v38 }
  0x37   :  { %499 = vmatprep.mubr.f32.mxu0 %v4216_v7 }
  0x3a   :  { %502 = vmatmul.mubr.f32.gmra.mrb[4].mxu0 %v3368_v48 }
  0x3b   :  { %507 = vmatprep.mubr.f32.mxu0 %v4216_v7 }
  0x3e   :  { %510 = vmatmul.mubr.f32.gmra.mrb[6].mxu0 %v3387_v56 }
  0x3f   :  { %515 = vmatprep.mubr.f32.mxu0 %v4216_v7 }
  0x42   :  { %518 = vmatmul.mubr.f32.gmra.mrb[8].mxu0 %v3403_v63 }
  0x43   :  { %523 = vmatprep.mubr.f32.mxu0 %v4216_v7 }
  0x46   :  { %526 = vmatmul.mubr.f32.gmra.mrb[10].mxu0 %v3419_v6 }
  0x47   :  { %531 = vmatprep.mubr.f32.mxu0 %v4216_v7 }
  0x4a   :  { %534 = vmatmul.mubr.f32.gmra.mrb[12].mxu0 %v3432_v17 }
  0x4b   :  { %539 = vmatprep.mubr.f32.mxu0 %v4216_v7 }
  0x4e   :  { %542 = vmatmul.mubr.f32.gmra.mrb[14].mxu0 %v3444_v22 }
  0x4f   :  { %616 = vmatprep.mubr.f32.mxu0 %v4216_v7 }
  0x52   :  { %620 = vmatmul.mubr.f32.vlgmr.msra.gmra.mrb[0].mxu0 %v184_v43 }
  0x53   :  { %625 = vmatprep.mubr.f32.mxu0 %v4216_v7  ;;  %2759 = vmatpush1.bf16.msra.mxu0 %v3359_v45 }
  0x54   :  { %2761 = vmatprep.subr.bf16.mxu0 %v3351_v39 }
  0x56   :  { %629 = vmatmul.mubr.f32.gmra.mrb[2].mxu0 %v195_v44 }
  0x57   :  { %634 = vmatprep.mubr.f32.mxu0 %v4216_v7 }
  0x5a   :  { %638 = vmatmul.mubr.f32.gmra.mrb[4].mxu0 %v206_v52 }
  0x5b   :  { %643 = vmatprep.mubr.f32.mxu0 %v4216_v7 }
  0x5e   :  { %647 = vmatmul.mubr.f32.gmra.mrb[6].mxu0 %v217_v60  ;;  %v963_v60 = vld [vmem:[%s4209_s3] sm:$0xff] }
  0x5f   :  { %652 = vmatprep.mubr.f32.mxu0 %v4216_v7  ;;  %v1021_v0 = vsel %vm1019_vm1, %v963_v60, 0  ;;  %v966_v60 = vld [vmem:[%s4209_s3 + $0x18] sm:$0xff] }
  0x60   :  { %v3606_v8 = vand.u32 4294901760, %v1021_v0 }
  0x62   :  { %656 = vmatmul.mubr.f32.gmra.mrb[8].mxu0 %v228_v3 }
  0x63   :  { %661 = vmatprep.mubr.f32.mxu0 %v4216_v7 }
  0x66   :  { %665 = vmatmul.mubr.f32.gmra.mrb[10].mxu0 %v239_v13  ;;  %v1024_v13 = vsel %vm1019_vm1, %v964_v1, 0 }
  0x67   :  { %670 = vmatprep.mubr.f32.mxu0 %v4216_v7  ;;  %v3612_v22 = vand.u32 4294901760, %v1024_v13 }
  0x69   :  { %v3619_v35 = vsub.f32 %v1024_v13, %v3612_v22 }
  0x6a   :  { %674 = vmatmul.mubr.f32.gmra.mrb[12].mxu0 %v250_v21  ;;  %v3610_v21 = vsub.f32 %v1021_v0, %v3606_v8 }
  0x6b   :  { %679 = vmatprep.mubr.f32.mxu0 %v4216_v7  ;;  %v4214_v54 = vand.u32 4294901760, %v3619_v35 }
  0x6c   :  { %v4215_v34 = vand.u32 4294901760, %v3610_v21 }
  0x6e   :  { %683 = vmatmul.mubr.f32.gmra.mrb[14].mxu0 %v261_v25  ;;  %v3625_v53 = vsub.f32 %v3610_v21, %v4215_v34  ;;  %v967_v34 = vld [vmem:[%s4209_s3 + $0x20] sm:$0xff] }
  0x6f   :  { %765 = vmatprep.mubr.f32.mxu0 %v4216_v7 }
  0x72   :  { %767 = vmatmul.mubr.f32.vlgmr.msra.gmra.mrb[0].mxu0 %v3335_v30 }
  0x73   :  { %772 = vmatprep.mubr.f32.mxu0 %v4216_v7  ;;  %2763 = vmatpush1.bf16.msra.mxu0 %v3353_v41 }
  0x76   :  { %774 = vmatmul.mubr.f32.gmra.mrb[2].mxu0 %v3337_v31 }
  0x77   :  { %779 = vmatprep.mubr.f32.mxu0 %v4216_v7 }
  0x7a   :  { %781 = vmatmul.mubr.f32.gmra.mrb[4].mxu0 %v3355_v42 }
  0x7b   :  { %786 = vmatprep.mubr.f32.mxu0 %v4216_v7 }
  0x7e   :  { %788 = vmatmul.mubr.f32.gmra.mrb[6].mxu0 %v3378_v51 }
  0x7f   :  { %793 = vmatprep.mubr.f32.mxu0 %v4216_v7 }
  0x82   :  { %795 = vmatmul.mubr.f32.gmra.mrb[8].mxu0 %v3395_v59 }
  0x83   :  { %800 = vmatprep.mubr.f32.mxu0 %v4216_v7 }
  0x86   :  { %802 = vmatmul.mubr.f32.gmra.mrb[10].mxu0 %v3411_v2 }
  0x87   :  { %807 = vmatprep.mubr.f32.mxu0 %v4216_v7 }
  0x8a   :  { %809 = vmatmul.mubr.f32.gmra.mrb[12].mxu0 %v3427_v12 }
  0x8b   :  { %814 = vmatprep.mubr.f32.mxu0 %v4216_v7 }
  0x8e   :  { %816 = vmatmul.mubr.f32.gmra.mrb[14].mxu0 %v3440_v20 }
  0x8f   :  { %890 = vmatprep.mubr.f32.mxu0 %v4216_v7 }
  0x92   :  { %892 = vmatmul.mubr.f32.vlgmr.msra.gmra.mrb[0].mxu0 %v3335_v30 }
  0x93   :  { %897 = vmatprep.mubr.f32.mxu0 %v4216_v7 }
  0x96   :  { %899 = vmatmul.mubr.f32.gmra.mrb[2].mxu0 %v3337_v31 }
  0x97   :  { %904 = vmatprep.mubr.f32.mxu0 %v4216_v7  ;;  %v61_v61 = vpop.permute.xlu1 %60 }
  0x9a   :  { %906 = vmatmul.mubr.f32.gmra.mrb[4].mxu0 %v3355_v42 }
  0x9b   :  { %911 = vmatprep.mubr.f32.mxu0 %v4216_v7  ;;  %v66_v14 = vpop.permute.xlu1 %65 }
  0x9e   :  { %913 = vmatmul.mubr.f32.gmra.mrb[6].mxu0 %v3378_v51 }
  0x9f   :  { %918 = vmatprep.mubr.f32.mxu0 %v4216_v7  ;;  %v76_v28 = vpop.permute.xlu1 %75 }
  0xa2   :  { %920 = vmatmul.mubr.f32.gmra.mrb[8].mxu0 %v3395_v59  ;;  %v51_v59 = vpop.permute.xlu0 %50 }
  0xa3   :  { %925 = vmatprep.mubr.f32.mxu0 %v4216_v7 }
  0xa6   :  { %927 = vmatmul.mubr.f32.gmra.mrb[10].mxu0 %v3411_v2  ;;  %v56_v2 = vpop.permute.xlu0 %55 }
  0xa7   :  { %932 = vmatprep.mubr.f32.mxu0 %v4216_v7 }
  0xaa   :  { %934 = vmatmul.mubr.f32.gmra.mrb[12].mxu0 %v3427_v12  ;;  %v71_v25 = vpop.permute.xlu0 %70 }
  0xab   :  { %939 = vmatprep.mubr.f32.mxu0 %v4216_v7 }
  0xae   :  { %941 = vmatmul.mubr.f32.gmra.mrb[14].mxu0 %v3440_v20 }
  0xaf   :  { %2292 = vmatprep.mubr.f32.mxu0 %v4216_v7 }
  0xe5   :  { %v188_v30 = vpop.f32.mrb[0].mxu1 }
  0xe6   :  { %v190_v31 = vpop.f32.mrb[1].mxu1  ;;  %v189_v62 = vadd.f32 %v188_v30, %v51_v59  ;;  %v81_v30 = vpop.permute.xlu0 %80 }
  0xe7   :  { %v191_v63 = vadd.f32 %v190_v31, %v51_v59 }
  0xe9   :  { %v199_v36 = vpop.f32.mrb[2].mxu1 }
  0xea   :  { %v201_v38 = vpop.f32.mrb[3].mxu1  ;;  %v200_v4 = vadd.f32 %v199_v36, %v56_v2 }
  0xeb   :  { %v202_v11 = vadd.f32 %v201_v38, %v56_v2 }
  0xed   :  { %v210_v39 = vpop.f32.mrb[4].mxu1 }
  0xee   :  { %v212_v41 = vpop.f32.mrb[5].mxu1  ;;  %v211_v18 = vadd.f32 %v210_v39, %v61_v61  ;;  %v3628_v39 = vand.u32 4294901760, %v1027_v10 }
  0xef   :  { %v213_v23 = vadd.f32 %v212_v41, %v61_v61  ;;  %v86_v41 = vpop.permute.xlu1 %85 }
  0xf1   :  { %v221_v42 = vpop.f32.mrb[6].mxu1 }
  0xf2   :  { %v223_v43 = vpop.f32.mrb[7].mxu1  ;;  %v222_v29 = vadd.f32 %v221_v42, %v66_v14 }
  0xf3   :  { %v224_v37 = vadd.f32 %v223_v43, %v66_v14 }
  0xf5   :  { %v232_v44 = vpop.f32.mrb[8].mxu1 }
  0xf6   :  { %v234_v45 = vpop.f32.mrb[9].mxu1  ;;  %v233_v15 = vadd.f32 %v232_v44, %v71_v25 }
  0xf7   :  { %v235_v16 = vadd.f32 %v234_v45, %v71_v25 }
  0xf9   :  { %v243_v48 = vpop.f32.mrb[10].mxu1 }
  0xfa   :  { %v245_v51 = vpop.f32.mrb[11].mxu1  ;;  %v244_v47 = vadd.f32 %v243_v48, %v76_v28 }
  0xfb   :  { %v246_v31 = vadd.f32 %v245_v51, %v76_v28 }
  0xfd   :  { %v3591_v52 = vpop.f32.mrb[12].mxu1 }
  0xfe   :  { %v3593_v56 = vpop.f32.mrb[13].mxu1  ;;  %v255_v42 = vadd.f32 %v3591_v52, %v81_v30 }
  0xff   :  { %v257_v43 = vadd.f32 %v3593_v56, %v81_v30 }
 0x101   :  { %v3595_v57 = vpop.f32.mrb[14].mxu1 }
 0x102   :  { %v3597_v58 = vpop.f32.mrb[15].mxu1  ;;  %v3633_v45 = vadd.f32 %v3595_v57, %v86_v41  ;;  %v3649_v57 = vsub.f32 %v3619_v35, %v4214_v54 }
 0x103   :  { %v3636_v48 = vadd.f32 %v3597_v58, %v86_v41 }
 0x165   :  { %v893_v3 = vpop.f32.mrb[0].mxu0 }
 0x166   :  { %v2957_v5 = vadd.f32 %v893_v3, %v189_v62  ;;  %v895_v6 = vpop.f32.mrb[1].mxu0  ;;  %v3653_v3 = vsub.f32 %v1027_v10, %v3628_v39 }
 0x167   :  { %v2959_v12 = vadd.f32 %v895_v6, %v191_v63  ;;  %v3657_v6 = vsel %vm1019_vm1, %v966_v60, 0 }
 0x168   :  { %3166 = vtanh.f32 %v2957_v5 }
 0x169   :  { %3168 = vtanh.f32 %v2959_v12  ;;  %v900_v17 = vpop.f32.mrb[2].mxu0 }
 0x16a   :  { %v2961_v19 = vadd.f32 %v900_v17, %v200_v4  ;;  %v902_v20 = vpop.f32.mrb[3].mxu0 }
 0x16b   :  { %v2963_v24 = vadd.f32 %v902_v20, %v202_v11 }
 0x16c   :  { %3170 = vtanh.f32 %v2961_v19 }
 0x16d   :  { %3172 = vtanh.f32 %v2963_v24  ;;  %v907_v26 = vpop.f32.mrb[4].mxu0 }
 0x16e   :  { %v2965_v32 = vadd.f32 %v907_v26, %v211_v18  ;;  %v909_v33 = vpop.f32.mrb[5].mxu0 }
 0x16f   :  { %v2967_v9 = vadd.f32 %v909_v33, %v213_v23 }
 0x170   :  { %3174 = vtanh.f32 %v2965_v32 }
 0x171   :  { %3176 = vtanh.f32 %v2967_v9  ;;  %v914_v40 = vpop.f32.mrb[6].mxu0 }
 0x172   :  { %v3167_v46 = vpop.eup %3166  ;;  %v2969_v49 = vadd.f32 %v914_v40, %v222_v29  ;;  %v916_v50 = vpop.f32.mrb[7].mxu0 }
 0x173   :  { %v3169_v55 = vpop.eup %3168  ;;  %v2971_v36 = vadd.f32 %v916_v50, %v224_v37  ;;  %v1046_v38 = vand.u32 4294901760, %v3167_v46 }
 0x174   :  { %3178 = vtanh.f32 %v2969_v49  ;;  %v1044_v44 = vand.u32 4294901760, %v3169_v55 }
 0x175   :  { %3180 = vtanh.f32 %v2971_v36  ;;  %v921_v59 = vpop.f32.mrb[8].mxu0  ;;  %v3638_v51 = vsub.f32 %v3167_v46, %v1046_v38 }
 0x176   :  { %v3171_v61 = vpop.eup %3170  ;;  %v2973_v52 = vadd.f32 %v921_v59, %v233_v15  ;;  %v923_v62 = vpop.f32.mrb[9].mxu0  ;;  %v3643_v56 = vsub.f32 %v3169_v55, %v1044_v44 }
 0x177   :  { %v3173_v58 = vpop.eup %3172  ;;  %v2975_v0 = vadd.f32 %v923_v62, %v235_v16  ;;  %v1050_v1 = vand.u32 4294901760, %v3171_v61  ;;  %v1221_v2 = vand.u32 4294901760, %v3638_v51 }
 0x178   :  { %3182 = vtanh.f32 %v2973_v52  ;;  %v1048_v4 = vand.u32 4294901760, %v3173_v58  ;;  %v1215_v5 = vand.u32 4294901760, %v3643_v56 }
 0x179   :  { %3184 = vtanh.f32 %v2975_v0  ;;  %v928_v11 = vpop.f32.mrb[10].mxu0  ;;  %v3659_v12 = vpack.c.bf16 %v1050_v1, %v1046_v38  ;;  %v3661_v13 = vsub.f32 %v3171_v61, %v1050_v1  ;;  %v1222_v14 = vsub.f32 %v3638_v51, %v1221_v2 }
 0x17a   :  { %v3175_v17 = vpop.eup %3174  ;;  %v2977_v18 = vadd.f32 %v928_v11, %v244_v47  ;;  %v930_v19 = vpop.f32.mrb[11].mxu0  ;;  %v3666_v20 = vpack.c.bf16 %v1048_v4, %v1044_v44  ;;  %v3668_v23 = vsub.f32 %v3173_v58, %v1048_v4  ;;  %v1216_v24 = vsub.f32 %v3643_v56, %v1215_v5 }
 0x17b   :  { %v3177_v25 = vpop.eup %3176  ;;  %v2979_v26 = vadd.f32 %v930_v19, %v246_v31  ;;  %v1054_v27 = vand.u32 4294901760, %v3175_v17  ;;  %v1223_v28 = vand.u32 4294901760, %v1222_v14  ;;  %v1233_v29 = vand.u32 4294901760, %v3661_v13 }
 0x17c   :  { %3186 = vtanh.f32 %v2977_v18  ;;  %2765 = vmatprep.subr.bf16.mxu1 %v3666_v20  ;;  %v1052_v32 = vand.u32 4294901760, %v3177_v25  ;;  %v1217_v33 = vand.u32 4294901760, %v1216_v24  ;;  %v1227_v37 = vand.u32 4294901760, %v3668_v23 }
 0x17d   :  { %3188 = vtanh.f32 %v2979_v26  ;;  %v935_v9 = vpop.f32.mrb[12].mxu0  ;;  %2767 = vmatpush1.bf16.msra.mxu1 %v3659_v12  ;;  %v3677_v10 = vsub.f32 %v3175_v17, %v1054_v27  ;;  %v1234_v15 = vsub.f32 %v3661_v13, %v1233_v29 }
 0x17e   :  { %v3179_v40 = vpop.eup %3178  ;;  %v2981_v46 = vadd.f32 %v935_v9, %v255_v42  ;;  %v937_v47 = vpop.f32.mrb[13].mxu0  ;;  %v3684_v49 = vsub.f32 %v3177_v25, %v1052_v32  ;;  %v1228_v50 = vsub.f32 %v3668_v23, %v1227_v37 }
 0x17f   :  { %v3181_v30 = vpop.eup %3180  ;;  %v2983_v31 = vadd.f32 %v937_v47, %v257_v43  ;;  %v1058_v36 = vand.u32 4294901760, %v3179_v40  ;;  %v1235_v38 = vand.u32 4294901760, %v1234_v15  ;;  %v1245_v41 = vand.u32 4294901760, %v3677_v10 }
 0x180   :  { %3190 = vtanh.f32 %v2981_v46  ;;  %v1056_v44 = vand.u32 4294901760, %v3181_v30  ;;  %v1229_v59 = vand.u32 4294901760, %v1228_v50  ;;  %v1239_v60 = vand.u32 4294901760, %v3684_v49 }
 0x181   :  { %3192 = vtanh.f32 %v2983_v31  ;;  %v942_v42 = vpop.f32.mrb[14].mxu0  ;;  %v3691_v61 = vpack.c.bf16 %v1058_v36, %v1054_v27  ;;  %v3693_v52 = vsub.f32 %v3179_v40, %v1058_v36  ;;  %v3695_v62 = vpack.c.bf16 %v1235_v38, %v1223_v28 }
 0x182   :  { %v3183_v58 = vpop.eup %3182  ;;  %v2985_v43 = vadd.f32 %v942_v42, %v3633_v45  ;;  %v944_v0 = vpop.f32.mrb[15].mxu0  ;;  %v3698_v1 = vpack.c.bf16 %v1056_v44, %v1052_v32  ;;  %v3700_v4 = vsub.f32 %v3181_v30, %v1056_v44  ;;  %v3702_v11 = vpack.c.bf16 %v1229_v59, %v1217_v33 }
 0x183   :  { %v3185_v14 = vpop.eup %3184  ;;  %v2987_v17 = vadd.f32 %v944_v0, %v3636_v48  ;;  %v1062_v18 = vand.u32 4294901760, %v3183_v58  ;;  %v1240_v19 = vsub.f32 %v3684_v49, %v1239_v60  ;;  %v1246_v24 = vsub.f32 %v3677_v10, %v1245_v41 }
 0x184   :  { %3194 = vtanh.f32 %v2985_v43  ;;  %2769 = vmatprep.subr.bf16.mxu1 %v3698_v1  ;;  %v1060_v45 = vand.u32 4294901760, %v3185_v14  ;;  %v1251_v25 = vand.u32 4294901760, %v3700_v4  ;;  %v1257_v26 = vand.u32 4294901760, %v3693_v52 }
 0x185   :  { %3196 = vtanh.f32 %v2987_v17  ;;  %2771 = vmatpush1.bf16.msra.mxu1 %v3691_v61  ;;  %v3715_v48 = vsub.f32 %v3183_v58, %v1062_v18  ;;  %v1241_v27 = vand.u32 4294901760, %v1240_v19  ;;  %v1247_v28 = vand.u32 4294901760, %v1246_v24 }
 0x186   :  { %v3187_v32 = vpop.eup %3186  ;;  %v3717_v33 = vsub.f32 %v3185_v14, %v1060_v45  ;;  %v1252_v9 = vsub.f32 %v3700_v4, %v1251_v25  ;;  %v1258_v15 = vsub.f32 %v3693_v52, %v1257_v26  ;;  %v3728_v31 = vpack.c.bf16 %v1227_v37, %v1215_v5 }
 0x187   :  { %v3189_v46 = vpop.eup %3188  ;;  %v1066_v47 = vand.u32 4294901760, %v3187_v32  ;;  %v1269_v50 = vand.u32 4294901760, %v3715_v48  ;;  %v3740_v0 = vpack.c.bf16 %v1233_v29, %v1221_v2 }
 0x188   :  { %v1064_v36 = vand.u32 4294901760, %v3189_v46  ;;  %v1253_v38 = vand.u32 4294901760, %v1252_v9  ;;  %v1259_v44 = vand.u32 4294901760, %v1258_v15  ;;  %v1263_v59 = vand.u32 4294901760, %v3717_v33 }
 0x189   :  { %v3731_v42 = vpack.c.bf16 %v1066_v47, %v1062_v18  ;;  %v3733_v58 = vsub.f32 %v3187_v32, %v1066_v47  ;;  %v1270_v43 = vsub.f32 %v3715_v48, %v1269_v50  ;;  %v3753_v15 = vand.u32 4294901760, %v3657_v6 }
 0x18a   :  { %v3191_v14 = vpop.eup %3190  ;;  %v3742_v5 = vpack.c.bf16 %v1064_v36, %v1060_v45  ;;  %v3744_v37 = vsub.f32 %v3189_v46, %v1064_v36  ;;  %v3746_v17 = vpack.c.bf16 %v1253_v38, %v1241_v27  ;;  %v3748_v19 = vpack.c.bf16 %v1259_v44, %v1247_v28 }
 0x18b   :  { %v3193_v18 = vpop.eup %3192  ;;  %v1070_v24 = vand.u32 4294901760, %v3191_v14  ;;  %v1264_v32 = vsub.f32 %v3717_v33, %v1263_v59  ;;  %v1281_v9 = vand.u32 4294901760, %v3733_v58  ;;  %v1271_v46 = vand.u32 4294901760, %v1270_v43 }
 0x18c   :  { %2773 = vmatprep.subr.bf16.mxu1 %v3742_v5  ;;  %v1068_v2 = vand.u32 4294901760, %v3193_v18  ;;  %v1275_v29 = vand.u32 4294901760, %v3744_v37  ;;  %v3767_v36 = vpack.c.bf16 %v1251_v25, %v1239_v60 }
 0x18d   :  { %2775 = vmatpush1.bf16.msra.mxu1 %v3731_v42  ;;  %v3762_v28 = vsub.f32 %v3191_v14, %v1070_v24  ;;  %v1282_v47 = vsub.f32 %v3733_v58, %v1281_v9  ;;  %v3777_v14 = vpack.c.bf16 %v1257_v26, %v1245_v41  ;;  %v3782_v25 = vpack.c.bf16 %v1281_v9, %v1269_v50 }
 0x18e   :  { %v3195_v38 = vpop.eup %3194  ;;  %v3769_v44 = vsub.f32 %v3193_v18, %v1068_v2  ;;  %v1276_v54 = vsub.f32 %v3744_v37, %v1275_v29  ;;  %v3779_v43 = vpack.c.bf16 %v1275_v29, %v1263_v59  ;;  %v1265_v40 = vand.u32 4294901760, %v1264_v32 }
 0x18f   :  { %v3197_v27 = vpop.eup %3196  ;;  %v1074_v45 = vand.u32 4294901760, %v3195_v38  ;;  %v1283_v30 = vand.u32 4294901760, %v1282_v47  ;;  %v1293_v60 = vand.u32 4294901760, %v3762_v28  ;;  %4220 = vst [vmem:[#allocation7_spill] sm:$0xff] %v3782_v25  ;;  %v1033_v26 = vsel %vm1019_vm1, %v967_v34, 0 }
 0x190   :  { %4219 = vst [vmem:[#allocation6_spill] sm:$0xff] %v3779_v43  ;;  %v1072_v18 = vand.u32 4294901760, %v3197_v27  ;;  %v1277_v55 = vand.u32 4294901760, %v1276_v54  ;;  %v1287_v16 = vand.u32 4294901760, %v3769_v44  ;;  %v4218_v50 = vand.u32 4294901760, %v3653_v3  ;;  %v968_v54 = vld [vmem:[%s4209_s3 + $0x28] sm:$0xff] }
 0x191   :  { %v3785_v7 = vpack.c.bf16 %v1074_v45, %v1070_v24  ;;  %v3787_v63 = vsub.f32 %v3195_v38, %v1074_v45  ;;  %v2790_v41 = vpack.c.bf16 %v1283_v30, %v1271_v46  ;;  %v3800_v24 = vsub.f32 %v3657_v6, %v3753_v15 }
 0x192   :  { %v3790_v59 = vpack.c.bf16 %v1072_v18, %v1068_v2  ;;  %v3792_v29 = vsub.f32 %v3197_v27, %v1072_v18  ;;  %v2788_v47 = vpack.c.bf16 %v1277_v55, %v1265_v40  ;;  %v1294_v32 = vsub.f32 %v3762_v28, %v1293_v60  ;;  %v969_v18 = vld [vmem:[%s4209_s3 + $0x30] sm:$0xff] }
 0x193   :  { %v1305_v30 = vand.u32 4294901760, %v3787_v63  ;;  %v1288_v55 = vsub.f32 %v3769_v44, %v1287_v16  ;;  %v3809_v9 = vand.u32 4294901760, %v1033_v26  ;;  %v1036_v45 = vsel %vm1019_vm1, %v968_v54, 0 }
 0x194   :  { %2777 = vmatprep.subr.bf16.mxu1 %v3790_v59  ;;  %v1299_v40 = vand.u32 4294901760, %v3792_v29  ;;  %v1140_v46 = vand.u32 4294901760, %v3649_v57  ;;  %v1150_v2 = vsub.f32 %v3653_v3, %v4218_v50  ;;  %v1160_v54 = vand.u32 4294901760, %v3800_v24 }
 0x195   :  { %2779 = vmatpush1.bf16.msra.mxu1 %v3785_v7  ;;  %v1306_v6 = vsub.f32 %v3787_v63, %v1305_v30  ;;  %v3816_v27 = vpack.c.bf16 %v1305_v30, %v1293_v60  ;;  %v1295_v60 = vand.u32 4294901760, %v1294_v32  ;;  %v1289_v57 = vand.u32 4294901760, %v1288_v55 }
 0x196   :  { %2781 = vmatprep.subr.bf16.mxu1 %v3702_v11  ;;  %v1300_v38 = vsub.f32 %v3792_v29, %v1299_v40  ;;  %v3824_v34 = vpack.c.bf16 %v1299_v40, %v1287_v16  ;;  %v4222_v11 = vand.u32 4294901760, %v3625_v53  ;;  %v3833_v25 = vsub.f32 %v1033_v26, %v3809_v9  ;;  %v970_v53 = vld [vmem:[%s4209_s3 + $0x38] sm:$0xff] }
 0x197   :  { %4221 = vst [vmem:[#allocation8_spill] sm:$0xff] %v3816_v27  ;;  %v1307_v30 = vand.u32 4294901760, %v1306_v6  ;;  %v3835_v43 = vand.u32 4294901760, %v1036_v45  ;;  %v4223_v16 = vmov 0.0   ;;  %v1039_v50 = vsel %vm1019_vm1, %v969_v18, 0 }
 0x198   :  { %1130 = vmatmul.mubr.f32.vlgmr.msra.gmra.mrb[16].mxu1 %v4222_v11  ;;  %v1301_v27 = vand.u32 4294901760, %v1300_v38  ;;  %v1161_v26 = vsub.f32 %v3800_v24, %v1160_v54  ;;  %v1151_v55 = vand.u32 4294901760, %v1150_v2  ;;  %v3851_v38 = vand.u32 4294901760, %v1039_v50 }
 0x199   :  { %2783 = vmatpush1.bf16.msra.mxu1 %v3695_v62  ;;  %1135 = vmatprep.mubr.f32.mxu1 %v4223_v16  ;;  %v2794_v40 = vpack.c.bf16 %v1307_v30, %v1295_v60  ;;  %v1171_v62 = vand.u32 4294901760, %v3833_v25  ;;  %v3849_v6 = vsub.f32 %v1036_v45, %v3835_v43 }
 0x19a   :  { %2785 = vmatprep.subr.bf16.mxu1 %v3746_v17  ;;  %v2792_v32 = vpack.c.bf16 %v1301_v27, %v1289_v57  ;;  %v1042_v17 = vsel %vm1019_vm1, %v970_v53, 0  ;;  %v1162_v27 = vand.u32 4294901760, %v1161_v26  ;;  %v3861_v45 = vsub.f32 %v1039_v50, %v3851_v38 }
 0x19b   :  { %v1172_v2 = vsub.f32 %v3833_v25, %v1171_v62  ;;  %v3863_v18 = vand.u32 4294901760, %v1042_v17  ;;  %v4226_v53 = vpack.c.bf16 %v3700_v4, %v3684_v49  ;;  %v4227_v26 = vpack.c.bf16 %v3693_v52, %v3677_v10  ;;  %v4234_v52 = vld [vmem:[#allocation6_spill] sm:$0xff] }
 0x19c   :  { %1141 = vmatmul.mubr.f32.gmra.mrb[18].mxu1 %v1140_v46  ;;  %v1182_v46 = vand.u32 4294901760, %v3849_v6  ;;  %v1193_v60 = vand.u32 4294901760, %v3861_v45  ;;  %v4231_v10 = vpack.c.bf16 %v3787_v63, %v3762_v28  ;;  %v4232_v63 = vand.u32 4294901760, %v3610_v21 }
 0x19d   :  { %2787 = vmatpush1.bf16.msra.mxu1 %v3748_v19  ;;  %1146 = vmatprep.mubr.f32.mxu1 %v4223_v16  ;;  %v1173_v19 = vand.u32 4294901760, %v1172_v2  ;;  %v3871_v30 = vsub.f32 %v1042_v17, %v3863_v18  ;;  %v4233_v49 = vand.u32 4294901760, %v3619_v35  ;;  %v4235_v4 = vand.u32 4294901760, %v3653_v3 }
 0x19e   :  { %2789 = vmatprep.subr.bf16.mxu1 %v2788_v47  ;;  %v1183_v47 = vsub.f32 %v3849_v6, %v1182_v46  ;;  %v1194_v11 = vsub.f32 %v3861_v45, %v1193_v60 }
 0x19f   :  { %v1204_v57 = vand.u32 4294901760, %v3871_v30 }
 0x1a0   :  { %1152 = vmatmul.mubr.f32.gmra.mrb[20].mxu1 %v1151_v55  ;;  %v1184_v50 = vand.u32 4294901760, %v1183_v47  ;;  %v4228_v55 = vpack.c.bf16 %v3744_v37, %v3717_v33 }
 0x1a1   :  { %2791 = vmatpush1.bf16.msra.mxu1 %v2790_v41  ;;  %1157 = vmatprep.mubr.f32.mxu1 %v4223_v16  ;;  %v4224_v41 = vpack.c.bf16 %v3668_v23, %v3643_v56  ;;  %v4225_v23 = vpack.c.bf16 %v3661_v13, %v3638_v51  ;;  %v4229_v51 = vpack.c.bf16 %v3733_v58, %v3715_v48 }
 0x1a2   :  { %2793 = vmatprep.subr.bf16.mxu1 %v2792_v32  ;;  %v1195_v32 = vand.u32 4294901760, %v1194_v11  ;;  %v4230_v13 = vpack.c.bf16 %v3792_v29, %v3769_v44 }
 0x1a4   :  { %1163 = vmatmul.mubr.f32.gmra.mrb[22].mxu1 %v1162_v27 }
 0x1a5   :  { %2795 = vmatpush1.bf16.msra.mxu1 %v2794_v40  ;;  %1168 = vmatprep.mubr.f32.mxu1 %v4223_v16  ;;  %v1205_v40 = vsub.f32 %v3871_v30, %v1204_v57 }
 0x1a6   :  { %2797 = vmatprep.subr.bf16.mxu1 %v4224_v41 }
 0x1a7   :  { %v1206_v56 = vand.u32 4294901760, %v1205_v40 }
 0x1a8   :  { %1174 = vmatmul.mubr.f32.gmra.mrb[24].mxu1 %v1173_v19 }
 0x1a9   :  { %1179 = vmatprep.mubr.f32.mxu1 %v4223_v16 }
 0x1ac   :  { %1185 = vmatmul.mubr.f32.gmra.mrb[26].mxu1 %v1184_v50 }
 0x1ad   :  { %1190 = vmatprep.mubr.f32.mxu1 %v4223_v16 }
 0x1b0   :  { %1196 = vmatmul.mubr.f32.gmra.mrb[28].mxu1 %v1195_v32 }
 0x1b1   :  { %1201 = vmatprep.mubr.f32.mxu1 %v4223_v16 }
 0x1b4   :  { %1207 = vmatmul.mubr.f32.gmra.mrb[30].mxu1 %v1206_v56 }
 0x1b5   :  { %1357 = vmatprep.mubr.f32.mxu1 %v4223_v16 }
 0x1b8   :  { %1359 = vmatmul.mubr.f32.vlgmr.msra.gmra.mrb[16].mxu1 %v3606_v8 }
 0x1b9   :  { %2799 = vmatpush1.bf16.msra.mxu1 %v4225_v23  ;;  %1364 = vmatprep.mubr.f32.mxu1 %v4223_v16 }
 0x1ba   :  { %2801 = vmatprep.subr.bf16.mxu1 %v4226_v53 }
 0x1bc   :  { %1366 = vmatmul.mubr.f32.gmra.mrb[18].mxu1 %v3612_v22 }
 0x1bd   :  { %2803 = vmatpush1.bf16.msra.mxu1 %v4227_v26  ;;  %1371 = vmatprep.mubr.f32.mxu1 %v4223_v16 }
 0x1be   :  { %2805 = vmatprep.subr.bf16.mxu1 %v4228_v55 }
 0x1c0   :  { %1373 = vmatmul.mubr.f32.gmra.mrb[20].mxu1 %v3628_v39 }
 0x1c1   :  { %2807 = vmatpush1.bf16.msra.mxu1 %v4229_v51  ;;  %1378 = vmatprep.mubr.f32.mxu1 %v4223_v16 }
 0x1c2   :  { %2809 = vmatprep.subr.bf16.mxu1 %v4230_v13 }
 0x1c4   :  { %1380 = vmatmul.mubr.f32.gmra.mrb[22].mxu1 %v3753_v15 }
 0x1c5   :  { %2811 = vmatpush1.bf16.msra.mxu1 %v4231_v10  ;;  %1385 = vmatprep.mubr.f32.mxu1 %v4223_v16 }
 0x1c6   :  { %2813 = vmatprep.subr.bf16.mxu1 %v3666_v20 }
 0x1c8   :  { %1387 = vmatmul.mubr.f32.gmra.mrb[24].mxu1 %v3809_v9 }
 0x1c9   :  { %1392 = vmatprep.mubr.f32.mxu1 %v4223_v16 }
 0x1cc   :  { %1394 = vmatmul.mubr.f32.gmra.mrb[26].mxu1 %v3835_v43 }
 0x1cd   :  { %1399 = vmatprep.mubr.f32.mxu1 %v4223_v16 }
 0x1d0   :  { %1401 = vmatmul.mubr.f32.gmra.mrb[28].mxu1 %v3851_v38 }
 0x1d1   :  { %1406 = vmatprep.mubr.f32.mxu1 %v4223_v16 }
 0x1d4   :  { %1408 = vmatmul.mubr.f32.gmra.mrb[30].mxu1 %v3863_v18 }
 0x1d5   :  { %1510 = vmatprep.mubr.f32.mxu1 %v4223_v16 }
 0x1d8   :  { %1513 = vmatmul.mubr.f32.vlgmr.msra.gmra.mrb[16].mxu1 %v3610_v21  ;;  %v4236_v21 = vld [vmem:[#allocation7_spill] sm:$0xff] }
 0x1d9   :  { %2815 = vmatpush1.bf16.msra.mxu1 %v3659_v12  ;;  %1518 = vmatprep.mubr.f32.mxu1 %v4223_v16 }
 0x1da   :  { %2817 = vmatprep.subr.bf16.mxu1 %v3698_v1 }
 0x1dc   :  { %1521 = vmatmul.mubr.f32.gmra.mrb[18].mxu1 %v3619_v35  ;;  %v4237_v35 = vld [vmem:[#allocation8_spill] sm:$0xff] }
 0x1dd   :  { %2819 = vmatpush1.bf16.msra.mxu1 %v3691_v61  ;;  %1526 = vmatprep.mubr.f32.mxu1 %v4223_v16 }
 0x1de   :  { %2821 = vmatprep.subr.bf16.mxu1 %v3742_v5 }
 0x1e0   :  { %1529 = vmatmul.mubr.f32.gmra.mrb[20].mxu1 %v3653_v3 }
 0x1e1   :  { %2823 = vmatpush1.bf16.msra.mxu1 %v3731_v42  ;;  %1534 = vmatprep.mubr.f32.mxu1 %v4223_v16 }
 0x1e2   :  { %2825 = vmatprep.subr.bf16.mxu1 %v3790_v59 }
 0x1e4   :  { %1537 = vmatmul.mubr.f32.gmra.mrb[22].mxu1 %v3800_v24 }
 0x1e5   :  { %2827 = vmatpush1.bf16.msra.mxu1 %v3785_v7  ;;  %1542 = vmatprep.mubr.f32.mxu1 %v4223_v16 }
 0x1e6   :  { %2829 = vmatprep.subr.bf16.mxu1 %v3728_v31 }
 0x1e8   :  { %1545 = vmatmul.mubr.f32.gmra.mrb[24].mxu1 %v3833_v25 }
 0x1e9   :  { %1550 = vmatprep.mubr.f32.mxu1 %v4223_v16 }
 0x1ec   :  { %1553 = vmatmul.mubr.f32.gmra.mrb[26].mxu1 %v3849_v6 }
 0x1ed   :  { %1558 = vmatprep.mubr.f32.mxu1 %v4223_v16 }
 0x1f0   :  { %1561 = vmatmul.mubr.f32.gmra.mrb[28].mxu1 %v3861_v45 }
 0x1f1   :  { %1566 = vmatprep.mubr.f32.mxu1 %v4223_v16 }
 0x1f4   :  { %1569 = vmatmul.mubr.f32.gmra.mrb[30].mxu1 %v3871_v30 }
 0x1f5   :  { %1655 = vmatprep.mubr.f32.mxu1 %v4223_v16 }
 0x1f8   :  { %1659 = vmatmul.mubr.f32.vlgmr.msra.gmra.mrb[16].mxu1 %v4232_v63 }
 0x1f9   :  { %2831 = vmatpush1.bf16.msra.mxu1 %v3740_v0  ;;  %1664 = vmatprep.mubr.f32.mxu1 %v4223_v16  ;;  %v2050_v0 = vld [vmem:[%s4211_s5] sm:$0x1] }
 0x1fa   :  { %2833 = vmatprep.subr.bf16.mxu1 %v3767_v36  ;;  %v2054_v28 = vsel %vm1019_vm1, %v2050_v0, 0 }
 0x1fb   :  { %v4025_v24 = vand.u32 4294901760, %v2054_v28 }
 0x1fc   :  { %1668 = vmatmul.mubr.f32.gmra.mrb[18].mxu1 %v4233_v49 }
 0x1fd   :  { %2835 = vmatpush1.bf16.msra.mxu1 %v3777_v14  ;;  %1673 = vmatprep.mubr.f32.mxu1 %v4223_v16  ;;  %v4032_v27 = vsub.f32 %v2054_v28, %v4025_v24 }
 0x1fe   :  { %2837 = vmatprep.subr.bf16.mxu1 %v4234_v52 }
 0x200   :  { %1677 = vmatmul.mubr.f32.gmra.mrb[20].mxu1 %v4235_v4 }
 0x201   :  { %2839 = vmatpush1.bf16.msra.mxu1 %v4236_v21  ;;  %1682 = vmatprep.mubr.f32.mxu1 %v4223_v16 }
 0x202   :  { %2841 = vmatprep.subr.bf16.mxu1 %v3824_v34 }
 0x204   :  { %1686 = vmatmul.mubr.f32.gmra.mrb[22].mxu1 %v1160_v54 }
 0x205   :  { %2843 = vmatpush1.bf16.msra.mxu1 %v4237_v35  ;;  %1691 = vmatprep.mubr.f32.mxu1 %v4223_v16 }
 0x206   :  { %2845 = vmatprep.subr.bf16.mxu1 %v3666_v20 }
 0x208   :  { %1695 = vmatmul.mubr.f32.gmra.mrb[24].mxu1 %v1171_v62 }
 0x209   :  { %1700 = vmatprep.mubr.f32.mxu1 %v4223_v16 }
 0x20c   :  { %1704 = vmatmul.mubr.f32.gmra.mrb[26].mxu1 %v1182_v46 }
 0x20d   :  { %1709 = vmatprep.mubr.f32.mxu1 %v4223_v16 }
 0x210   :  { %1713 = vmatmul.mubr.f32.gmra.mrb[28].mxu1 %v1193_v60  ;;  %v2139_v60 = vand.u32 4294901760, %v4032_v27 }
 0x211   :  { %1718 = vmatprep.mubr.f32.mxu1 %v4223_v16 }
 0x214   :  { %1722 = vmatmul.mubr.f32.gmra.mrb[30].mxu1 %v1204_v57 }
 0x215   :  { %1840 = vmatprep.mubr.f32.mxu1 %v4223_v16 }
 0x218   :  { %1842 = vmatmul.mubr.f32.vlgmr.msra.gmra.mrb[16].mxu1 %v3606_v8 }
 0x219   :  { %2847 = vmatpush1.bf16.msra.mxu1 %v3659_v12  ;;  %1847 = vmatprep.mubr.f32.mxu1 %v4223_v16  ;;  %v987_v12 = vpop.permute.xlu1 %986 }
 0x21a   :  { %2849 = vmatprep.subr.bf16.mxu1 %v3698_v1 }
 0x21c   :  { %1849 = vmatmul.mubr.f32.gmra.mrb[18].mxu1 %v3612_v22 }
 0x21d   :  { %2851 = vmatpush1.bf16.msra.mxu1 %v3691_v61  ;;  %1854 = vmatprep.mubr.f32.mxu1 %v4223_v16  ;;  %v997_v37 = vpop.permute.xlu1 %996 }
 0x21e   :  { %2853 = vmatprep.subr.bf16.mxu1 %v3742_v5 }
 0x220   :  { %1856 = vmatmul.mubr.f32.gmra.mrb[20].mxu1 %v3628_v39 }
 0x221   :  { %2855 = vmatpush1.bf16.msra.mxu1 %v3731_v42  ;;  %1861 = vmatprep.mubr.f32.mxu1 %v4223_v16  ;;  %v1007_v30 = vpop.permute.xlu1 %1006 }
 0x222   :  { %2857 = vmatprep.subr.bf16.mxu1 %v3790_v59 }
 0x224   :  { %1863 = vmatmul.mubr.f32.gmra.mrb[22].mxu1 %v3753_v15 }
 0x225   :  { %2859 = vmatpush1.bf16.msra.mxu1 %v3785_v7  ;;  %1868 = vmatprep.mubr.f32.mxu1 %v4223_v16  ;;  %v982_v7 = vpop.permute.xlu0 %981 }
 0x228   :  { %1870 = vmatmul.mubr.f32.gmra.mrb[24].mxu1 %v3809_v9 }
 0x229   :  { %1875 = vmatprep.mubr.f32.mxu1 %v4223_v16  ;;  %v992_v33 = vpop.permute.xlu0 %991 }
 0x22c   :  { %1877 = vmatmul.mubr.f32.gmra.mrb[26].mxu1 %v3835_v43 }
 0x22d   :  { %1882 = vmatprep.mubr.f32.mxu1 %v4223_v16  ;;  %v1002_v34 = vpop.permute.xlu0 %1001 }
 0x230   :  { %1884 = vmatmul.mubr.f32.gmra.mrb[28].mxu1 %v3851_v38 }
 0x231   :  { %1889 = vmatprep.mubr.f32.mxu1 %v4223_v16  ;;  %v1012_v21 = vpop.permute.xlu0 %1011 }
 0x234   :  { %1891 = vmatmul.mubr.f32.gmra.mrb[30].mxu1 %v3863_v18 }
 0x235   :  { %1977 = vmatprep.mubr.f32.mxu1 %v4223_v16 }
 0x238   :  { %1979 = vmatmul.mubr.f32.vlgmr.msra.gmra.mrb[16].mxu1 %v3606_v8 }
 0x239   :  { %1984 = vmatprep.mubr.f32.mxu1 %v4223_v16 }
 0x23c   :  { %1986 = vmatmul.mubr.f32.gmra.mrb[18].mxu1 %v3612_v22 }
 0x23d   :  { %1991 = vmatprep.mubr.f32.mxu1 %v4223_v16 }
 0x240   :  { %1993 = vmatmul.mubr.f32.gmra.mrb[20].mxu1 %v3628_v39 }
 0x241   :  { %1998 = vmatprep.mubr.f32.mxu1 %v4223_v16 }
 0x244   :  { %2000 = vmatmul.mubr.f32.gmra.mrb[22].mxu1 %v3753_v15 }
 0x245   :  { %2005 = vmatprep.mubr.f32.mxu1 %v4223_v16 }
 0x248   :  { %2007 = vmatmul.mubr.f32.gmra.mrb[24].mxu1 %v3809_v9 }
 0x249   :  { %2012 = vmatprep.mubr.f32.mxu1 %v4223_v16 }
 0x24c   :  { %2014 = vmatmul.mubr.f32.gmra.mrb[26].mxu1 %v3835_v43 }
 0x24d   :  { %2019 = vmatprep.mubr.f32.mxu1 %v4223_v16 }
 0x250   :  { %2021 = vmatmul.mubr.f32.gmra.mrb[28].mxu1 %v3851_v38 }
 0x251   :  { %2026 = vmatprep.mubr.f32.mxu1 %v4223_v16 }
 0x254   :  { %2028 = vmatmul.mubr.f32.gmra.mrb[30].mxu1 %v3863_v18 }
 0x255   :  { %2136 = vmatprep.mubr.f32.mxu1 %v4223_v16 }
 0x30b   :  { %v1980_v8 = vpop.f32.mrb[16].mxu1 }
 0x30c   :  { %v2988_v22 = vadd.f32 %v1980_v8, %v982_v7  ;;  %v1982_v39 = vpop.f32.mrb[17].mxu1 }
 0x30d   :  { %v2989_v3 = vadd.f32 %v1982_v39, %v982_v7 }
 0x30e   :  { %3198 = vtanh.f32 %v2988_v22 }
 0x30f   :  { %3200 = vtanh.f32 %v2989_v3  ;;  %v1987_v20 = vpop.f32.mrb[18].mxu1 }
 0x310   :  { %v2990_v61 = vadd.f32 %v1987_v20, %v987_v12  ;;  %v1989_v1 = vpop.f32.mrb[19].mxu1 }
 0x311   :  { %v2991_v48 = vadd.f32 %v1989_v1, %v987_v12 }
 0x312   :  { %3202 = vtanh.f32 %v2990_v61 }
 0x313   :  { %3204 = vtanh.f32 %v2991_v48  ;;  %v1994_v31 = vpop.f32.mrb[20].mxu1 }
 0x314   :  { %v2992_v42 = vadd.f32 %v1994_v31, %v992_v33  ;;  %v1996_v58 = vpop.f32.mrb[21].mxu1 }
 0x315   :  { %v2993_v5 = vadd.f32 %v1996_v58, %v992_v33 }
 0x316   :  { %3206 = vtanh.f32 %v2992_v42 }
 0x317   :  { %3208 = vtanh.f32 %v2993_v5  ;;  %v2001_v15 = vpop.f32.mrb[22].mxu1 }
 0x318   :  { %v3199_v36 = vpop.eup %3198  ;;  %v2994_v44 = vadd.f32 %v2001_v15, %v997_v37  ;;  %v2003_v14 = vpop.f32.mrb[23].mxu1 }
 0x319   :  { %v3201_v43 = vpop.eup %3200  ;;  %v2995_v25 = vadd.f32 %v2003_v14, %v997_v37  ;;  %v2058_v59 = vand.u32 4294901760, %v3199_v36  ;;  %v1017_v15 = vpop.permute.xlu1 %1016 }
 0x31a   :  { %3210 = vtanh.f32 %v2994_v44  ;;  %v2056_v29 = vand.u32 4294901760, %v3201_v43 }
 0x31b   :  { %3212 = vtanh.f32 %v2995_v25  ;;  %v2008_v9 = vpop.f32.mrb[24].mxu1  ;;  %v4027_v54 = vsub.f32 %v3199_v36, %v2058_v59 }
 0x31c   :  { %v3203_v62 = vpop.eup %3202  ;;  %v2996_v6 = vadd.f32 %v2008_v9, %v1002_v34  ;;  %v2010_v38 = vpop.f32.mrb[25].mxu1  ;;  %v4029_v17 = vsub.f32 %v3201_v43, %v2056_v29 }
 0x31d   :  { %v3205_v2 = vpop.eup %3204  ;;  %v2997_v46 = vadd.f32 %v2010_v38, %v1002_v34  ;;  %v2062_v45 = vand.u32 4294901760, %v3203_v62  ;;  %v2156_v18 = vand.u32 4294901760, %v4027_v54 }
 0x31e   :  { %3214 = vtanh.f32 %v2996_v6  ;;  %v2060_v19 = vand.u32 4294901760, %v3205_v2  ;;  %v2150_v47 = vand.u32 4294901760, %v4029_v17 }
 0x31f   :  { %3216 = vtanh.f32 %v2997_v46  ;;  %v2015_v41 = vpop.f32.mrb[26].mxu1  ;;  %v4037_v50 = vpack.c.bf16 %v2062_v45, %v2058_v59  ;;  %v4039_v11 = vsub.f32 %v3203_v62, %v2062_v45  ;;  %v2157_v57 = vsub.f32 %v4027_v54, %v2156_v18 }
 0x320   :  { %v3207_v32 = vpop.eup %3206  ;;  %v2998_v40 = vadd.f32 %v2015_v41, %v1007_v30  ;;  %v2017_v56 = vpop.f32.mrb[27].mxu1  ;;  %v4044_v23 = vpack.c.bf16 %v2060_v19, %v2056_v29  ;;  %v4046_v53 = vsub.f32 %v3205_v2, %v2060_v19  ;;  %v2151_v26 = vsub.f32 %v4029_v17, %v2150_v47 }
 0x321   :  { %v3209_v55 = vpop.eup %3208  ;;  %v2999_v51 = vadd.f32 %v2017_v56, %v1007_v30  ;;  %v2066_v13 = vand.u32 4294901760, %v3207_v32  ;;  %v2158_v10 = vand.u32 4294901760, %v2157_v57  ;;  %v2168_v63 = vand.u32 4294901760, %v4039_v11 }
 0x322   :  { %3218 = vtanh.f32 %v2998_v40  ;;  %2861 = vmatprep.subr.bf16.mxu1 %v4044_v23  ;;  %v2064_v49 = vand.u32 4294901760, %v3209_v55  ;;  %v2152_v52 = vand.u32 4294901760, %v2151_v26  ;;  %v2162_v4 = vand.u32 4294901760, %v4046_v53 }
 0x323   :  { %3220 = vtanh.f32 %v2999_v51  ;;  %v2022_v35 = vpop.f32.mrb[28].mxu1  ;;  %2863 = vmatpush1.bf16.msra.mxu1 %v4037_v50  ;;  %v4055_v7 = vsub.f32 %v3207_v32, %v2066_v13  ;;  %v2169_v8 = vsub.f32 %v4039_v11, %v2168_v63  ;;  %v2892_v22 = vpack.c.bf16 %v4046_v53, %v4029_v17 }
 0x324   :  { %v3211_v39 = vpop.eup %3210  ;;  %v3000_v3 = vadd.f32 %v2022_v35, %v1012_v21  ;;  %v2024_v12 = vpop.f32.mrb[29].mxu1  ;;  %v4062_v20 = vsub.f32 %v3209_v55, %v2064_v49  ;;  %v2163_v61 = vsub.f32 %v4046_v53, %v2162_v4  ;;  %v2894_v1 = vpack.c.bf16 %v4039_v11, %v4027_v54 }
 0x325   :  { %v3213_v48 = vpop.eup %3212  ;;  %v3001_v33 = vadd.f32 %v2024_v12, %v1012_v21  ;;  %v2070_v31 = vand.u32 4294901760, %v3211_v39  ;;  %v2170_v42 = vand.u32 4294901760, %v2169_v8  ;;  %v2180_v58 = vand.u32 4294901760, %v4055_v7 }
 0x326   :  { %3222 = vtanh.f32 %v3000_v3  ;;  %v2068_v0 = vand.u32 4294901760, %v3213_v48  ;;  %v2164_v5 = vand.u32 4294901760, %v2163_v61  ;;  %v2174_v37 = vand.u32 4294901760, %v4062_v20 }
 0x327   :  { %3224 = vtanh.f32 %v3001_v33  ;;  %v2029_v28 = vpop.f32.mrb[30].mxu1  ;;  %v4069_v36 = vpack.c.bf16 %v2070_v31, %v2066_v13  ;;  %v4071_v44 = vsub.f32 %v3211_v39, %v2070_v31  ;;  %v2878_v14 = vpack.c.bf16 %v2170_v42, %v2158_v10 }
 0x328   :  { %v3215_v43 = vpop.eup %3214  ;;  %v3002_v25 = vadd.f32 %v2029_v28, %v1017_v15  ;;  %v2031_v59 = vpop.f32.mrb[31].mxu1  ;;  %v4073_v29 = vpack.c.bf16 %v2068_v0, %v2064_v49  ;;  %v4075_v34 = vsub.f32 %v3213_v48, %v2068_v0  ;;  %v2876_v9 = vpack.c.bf16 %v2164_v5, %v2152_v52 }
 0x329   :  { %v3217_v62 = vpop.eup %3216  ;;  %v3003_v6 = vadd.f32 %v2031_v59, %v1017_v15  ;;  %v2175_v38 = vsub.f32 %v4062_v20, %v2174_v37  ;;  %v2074_v2 = vand.u32 4294901760, %v3215_v43  ;;  %v2181_v46 = vsub.f32 %v4055_v7, %v2180_v58 }
 0x32a   :  { %3226 = vtanh.f32 %v3002_v25  ;;  %2865 = vmatprep.subr.bf16.mxu1 %v4073_v29  ;;  %2877 = vmatprep.subr.bf16.mxu0 %v2876_v9  ;;  %v2072_v45 = vand.u32 4294901760, %v3217_v62  ;;  %v2186_v19 = vand.u32 4294901760, %v4075_v34  ;;  %v2192_v30 = vand.u32 4294901760, %v4071_v44 }
 0x32b   :  { %3228 = vtanh.f32 %v3003_v6  ;;  %2867 = vmatpush1.bf16.msra.mxu1 %v4069_v36  ;;  %2879 = vmatpush1.bf16.msra.mxu0 %v2878_v14  ;;  %v2176_v41 = vand.u32 4294901760, %v2175_v38  ;;  %v4087_v57 = vsub.f32 %v3215_v43, %v2074_v2  ;;  %v2182_v32 = vand.u32 4294901760, %v2181_v46 }
 0x32c   :  { %v3219_v40 = vpop.eup %3218  ;;  %v4089_v56 = vsub.f32 %v3217_v62, %v2072_v45  ;;  %v2187_v26 = vsub.f32 %v4075_v34, %v2186_v19  ;;  %v2193_v55 = vsub.f32 %v4071_v44, %v2192_v30  ;;  %v2896_v51 = vpack.c.bf16 %v4075_v34, %v4062_v20 }
 0x32d   :  { %v3221_v13 = vpop.eup %3220  ;;  %v2078_v10 = vand.u32 4294901760, %v3219_v40  ;;  %v2204_v49 = vand.u32 4294901760, %v4087_v57  ;;  %v2898_v52 = vpack.c.bf16 %v4071_v44, %v4055_v7  ;;  %v4100_v21 = vpack.c.bf16 %v2162_v4, %v2150_v47 }
 0x32e   :  { %v2076_v35 = vand.u32 4294901760, %v3221_v13  ;;  %v2188_v8 = vand.u32 4294901760, %v2187_v26  ;;  %v2194_v39 = vand.u32 4294901760, %v2193_v55  ;;  %v2198_v3 = vand.u32 4294901760, %v4089_v56 }
 0x32f   :  { %v4103_v12 = vpack.c.bf16 %v2078_v10, %v2074_v2  ;;  %v4105_v61 = vsub.f32 %v3219_v40, %v2078_v10  ;;  %v2205_v48 = vsub.f32 %v4087_v57, %v2204_v49  ;;  %v4112_v33 = vpack.c.bf16 %v2168_v63, %v2156_v18 }
 0x330   :  { %v3223_v31 = vpop.eup %3222  ;;  %v4114_v47 = vpack.c.bf16 %v2076_v35, %v2072_v45  ;;  %v4116_v4 = vsub.f32 %v3221_v13, %v2076_v35  ;;  %v2880_v42 = vpack.c.bf16 %v2188_v8, %v2176_v41  ;;  %v2882_v0 = vpack.c.bf16 %v2194_v39, %v2182_v32 }
 0x331   :  { %v3225_v5 = vpop.eup %3224  ;;  %v2199_v15 = vsub.f32 %v4089_v56, %v2198_v3  ;;  %v2082_v28 = vand.u32 4294901760, %v3223_v31  ;;  %v2216_v14 = vand.u32 4294901760, %v4105_v61  ;;  %v2140_v43 = vsub.f32 %v4032_v27, %v2139_v60 }
 0x332   :  { %2869 = vmatprep.subr.bf16.mxu1 %v4114_v47  ;;  %2881 = vmatprep.subr.bf16.mxu0 %v2880_v42  ;;  %v2080_v18 = vand.u32 4294901760, %v3225_v5  ;;  %v2210_v63 = vand.u32 4294901760, %v4116_v4  ;;  %v2900_v25 = vpack.c.bf16 %v4116_v4, %v4089_v56  ;;  %v2902_v59 = vpack.c.bf16 %v4105_v61, %v4087_v57 }
 0x333   :  { %2871 = vmatpush1.bf16.msra.mxu1 %v4103_v12  ;;  %2883 = vmatpush1.bf16.msra.mxu0 %v2882_v0  ;;  %v2227_v9 = vsub.f32 %v3223_v31, %v2082_v28  ;;  %v2206_v62 = vand.u32 4294901760, %v2205_v48  ;;  %v2217_v6 = vsub.f32 %v4105_v61, %v2216_v14  ;;  %v4133_v38 = vpack.c.bf16 %v2186_v19, %v2174_v37 }
 0x334   :  { %v3227_v2 = vpop.eup %3226  ;;  %v2221_v46 = vsub.f32 %v3225_v5, %v2080_v18  ;;  %v2211_v45 = vsub.f32 %v4116_v4, %v2210_v63  ;;  %v4138_v41 = vpack.c.bf16 %v2192_v30, %v2180_v58  ;;  %v4140_v57 = vpack.c.bf16 %v2210_v63, %v2198_v3 }
 0x335   :  { %v3229_v32 = vpop.eup %3228  ;;  %v2086_v40 = vand.u32 4294901760, %v3227_v2  ;;  %v2218_v56 = vand.u32 4294901760, %v2217_v6  ;;  %v2228_v26 = vand.u32 4294901760, %v2227_v9  ;;  %v2934_v55 = vpack.c.bf16 %v2216_v14, %v2204_v49 }
 0x336   :  { %v2084_v13 = vand.u32 4294901760, %v3229_v32  ;;  %v2200_v10 = vand.u32 4294901760, %v2199_v15  ;;  %v2212_v35 = vand.u32 4294901760, %v2211_v45  ;;  %v2222_v37 = vand.u32 4294901760, %v2221_v46 }
 0x337   :  { %v4142_v19 = vpack.c.bf16 %v2086_v40, %v2082_v28  ;;  %v2239_v8 = vsub.f32 %v3227_v2, %v2086_v40  ;;  %v2886_v39 = vpack.c.bf16 %v2218_v56, %v2206_v62  ;;  %v2229_v30 = vsub.f32 %v2227_v9, %v2228_v26 }
 0x338   :  { %v4144_v61 = vpack.c.bf16 %v2084_v13, %v2080_v18  ;;  %v2233_v48 = vsub.f32 %v3229_v32, %v2084_v13  ;;  %v2884_v58 = vpack.c.bf16 %v2212_v35, %v2200_v10  ;;  %v2223_v4 = vsub.f32 %v2221_v46, %v2222_v37 }
 0x339   :  { %v2240_v3 = vand.u32 4294901760, %v2239_v8  ;;  %v2906_v31 = vpack.c.bf16 %v2239_v8, %v2227_v9  ;;  %v2141_v0 = vand.u32 4294901760, %v2140_v43  ;;  %v2230_v18 = vand.u32 4294901760, %v2229_v30 }
 0x33a   :  { %2873 = vmatprep.subr.bf16.mxu1 %v4144_v61  ;;  %2885 = vmatprep.subr.bf16.mxu0 %v2884_v58  ;;  %v2234_v49 = vand.u32 4294901760, %v2233_v48  ;;  %v2904_v42 = vpack.c.bf16 %v2233_v48, %v2221_v46  ;;  %v2224_v62 = vand.u32 4294901760, %v2223_v4 }
 0x33b   :  { %2875 = vmatpush1.bf16.msra.mxu1 %v4142_v19  ;;  %2887 = vmatpush1.bf16.msra.mxu0 %v2886_v39  ;;  %v2241_v5 = vsub.f32 %v2239_v8, %v2240_v3  ;;  %v2938_v15 = vpack.c.bf16 %v2240_v3, %v2228_v26 }
 0x33c   :  { %v2235_v28 = vsub.f32 %v2233_v48, %v2234_v49  ;;  %v2936_v14 = vpack.c.bf16 %v2234_v49, %v2222_v37 }
 0x33d   :  { %v2242_v63 = vand.u32 4294901760, %v2241_v5 }
 0x33e   :  { %v2236_v6 = vand.u32 4294901760, %v2235_v28  ;;  %2142 = vmatmul.mubr.f32.vlgmr.msra.gmra.mrb[32].mxu1 %v2141_v0 }
 0x33f   :  { %v2890_v9 = vpack.c.bf16 %v2242_v63, %v2230_v18 }
 0x340   :  { %v2888_v2 = vpack.c.bf16 %v2236_v6, %v2224_v62 }
 0x342   :  { %2889 = vmatprep.subr.bf16.mxu0 %v2888_v2 }
 0x343   :  { %2891 = vmatpush1.bf16.msra.mxu0 %v2890_v9 }
 0x344   :  { %2893 = vmatprep.subr.bf16.mxu0 %v2892_v22 }
 0x346   :  { %2294 = vmatmul.mubr.f32.vlgmr.msra.gmra.mrb[16].mxu0 %v4025_v24 }
 0x347   :  { %2895 = vmatpush1.bf16.msra.mxu0 %v2894_v1  ;;  %2396 = vmatprep.mubr.f32.mxu0 %v4223_v16 }
 0x348   :  { %2897 = vmatprep.subr.bf16.mxu0 %v2896_v51 }
 0x34b   :  { %2899 = vmatpush1.bf16.msra.mxu0 %v2898_v52 }
 0x34c   :  { %2901 = vmatprep.subr.bf16.mxu0 %v2900_v25 }
 0x34f   :  { %2903 = vmatpush1.bf16.msra.mxu0 %v2902_v59 }
 0x350   :  { %2905 = vmatprep.subr.bf16.mxu0 %v2904_v42 }
 0x353   :  { %2907 = vmatpush1.bf16.msra.mxu0 %v2906_v31 }
 0x354   :  { %2909 = vmatprep.subr.bf16.mxu0 %v4044_v23 }
 0x356   :  { %2399 = vmatmul.mubr.f32.vlgmr.msra.gmra.mrb[16].mxu0 %v4032_v27  ;;  %v3256_v27 = vmov 1966171168  }
 0x357   :  { %2911 = vmatpush1.bf16.msra.mxu0 %v4037_v50  ;;  %2485 = vmatprep.mubr.f32.mxu0 %v4223_v16 }
 0x358   :  { %2913 = vmatprep.subr.bf16.mxu0 %v4073_v29 }
 0x35b   :  { %2915 = vmatpush1.bf16.msra.mxu0 %v4069_v36 }
 0x35c   :  { %2917 = vmatprep.subr.bf16.mxu0 %v4114_v47 }
 0x35f   :  { %2919 = vmatpush1.bf16.msra.mxu0 %v4103_v12 }
 0x360   :  { %2921 = vmatprep.subr.bf16.mxu0 %v4144_v61 }
 0x363   :  { %2923 = vmatpush1.bf16.msra.mxu0 %v4142_v19 }
 0x364   :  { %2925 = vmatprep.subr.bf16.mxu0 %v4100_v21 }
 0x366   :  { %2489 = vmatmul.mubr.f32.vlgmr.msra.gmra.mrb[16].mxu0 %v2139_v60  ;;  %v2707_v60 = vunpack.c.l.s4 %v3256_v27 }
 0x367   :  { %2927 = vmatpush1.bf16.msra.mxu0 %v4112_v33  ;;  %2607 = vmatprep.mubr.f32.mxu0 %v4223_v16 }
 0x368   :  { %2929 = vmatprep.subr.bf16.mxu0 %v4133_v38  ;;  %v2708_v53 = vunpack.c.0.s8 %v2707_v60 }
 0x36b   :  { %2931 = vmatpush1.bf16.msra.mxu0 %v4138_v41 }
 0x36c   :  { %2933 = vmatprep.subr.bf16.mxu0 %v4140_v57 }
 0x36f   :  { %2935 = vmatpush1.bf16.msra.mxu0 %v2934_v55 }
 0x370   :  { %2937 = vmatprep.subr.bf16.mxu0 %v2936_v14 }
 0x373   :  { %2939 = vmatpush1.bf16.msra.mxu0 %v2938_v15 }
 0x374   :  { %2941 = vmatprep.subr.bf16.mxu0 %v4044_v23 }
 0x376   :  { %2609 = vmatmul.mubr.f32.vlgmr.msra.gmra.mrb[16].mxu0 %v4025_v24 }
 0x377   :  { %2943 = vmatpush1.bf16.msra.mxu0 %v4037_v50  ;;  %2695 = vmatprep.mubr.f32.mxu0 %v4223_v16  ;;  %v2052_v16 = vstv %s4212_s6  ;;  %v2709_v50 = vlaneseq  ;;  %s3230_s6 = scalar_lea.vmem %s2733_s22, 32 }
 0x378   :  { %2945 = vmatprep.subr.bf16.mxu0 %v4073_v29  ;;  %p3231_p0 = scmp.ne.s32.totalorder %s2733_s22, %s3230_s6  ;;  %p3236_p2 = scmp.lt.s32.totalorder %s3230_s6, %s3230_s6 }
 0x379   :  { %v2710_v7 = vshrl.u32 %v2709_v50, 7  ;;  %vm2723_vm2 = vcmp.lt.s32.totalorder %v2709_v50, 256 }
 0x37a   :  { %p3237_p3 = por %p3236_p2, %p3235_p1 }
 0x37b   :  { %2947 = vmatpush1.bf16.msra.mxu0 %v4069_v36  ;;  %v2711_v44 = vsub.s32 %v2708_v53, %v2710_v7 }
 0x37c   :  { %2949 = vmatprep.subr.bf16.mxu0 %v4114_v47  ;;  %p3238_p4 = pnand %p3237_p3, %p3231_p0 }
 0x37f   :  { %2951 = vmatpush1.bf16.msra.mxu0 %v4103_v12 }
 0x380   :  { %2953 = vmatprep.subr.bf16.mxu0 %v4144_v61 }
 0x383   :  { %2955 = vmatpush1.bf16.msra.mxu0 %v4142_v19 }
 0x386   :  { %2697 = vmatmul.mubr.f32.vlgmr.msra.gmra.mrb[16].mxu0 %v4025_v24 }
 0x411   :  { %v2143_v54 = vpop.f32.mrb[32].mxu1 }
 0x412   :  { %v2145_v17 = vpop.f32.mrb[33].mxu1  ;;  %v2144_v11 = vadd.f32 %v2143_v54, %v2052_v16 }
 0x413   :  { %v2146_v23 = vadd.f32 %v2145_v17, %v2052_v16 }
 0x459   :  { %v2698_v22 = vpop.f32.mrb[16].mxu0 }
 0x45a   :  { %v3005_v20 = vadd.f32 %v2698_v22, %v2144_v11  ;;  %v2700_v1 = vpop.f32.mrb[17].mxu0 }
 0x45b   :  { %v3007_v36 = vadd.f32 %v2700_v1, %v2146_v23 }
 0x45d   :  { %v2705_v29 = vcombine.low %v3005_v20, %v3007_v36 }
 0x45f   :  { %v2712_v24 = vrot.slane %v2705_v29, %v2711_v44 }
 0x461   :  { %v2719_v34 = vrot.slane %v2712_v24, %v2711_v44 }
 0x463   :  { %2725 = vst.msk [vmem:[#allocation3] sm:$0x3] %vm2723_vm2, %v2719_v34 }
 0x464   :  { %3241 = shalt.err (!%p3238_p4)
}
 0x465   :  { %s3242_s24 = scalar_lea.hbm %s4213_s7, 32 }
 0x466   :  { %p3243_p5 = scmp.ne.s32.totalorder %s4213_s7, %s3242_s24  ;;  %p3246_p6 = scmp.lt.u32.totalorder %s3242_s24, %s4213_s7 }
 0x468   :  { %p3248_p7 = pnand %p3246_p6, %p3243_p5 }
 0x46a   :  { %3251 = shalt.err (!%p3248_p7)
}
 0x46b   :  { %2735 = dma.vmem_to_hbm [thread:$0]  %s2733_s22, 32, %s4213_s7, [#allocation4]  }
 0x46c   :  { %3252 = dma.done.wait [#allocation4], 32  }
 0x46d   :  { %3253 = vsyncadd [#allocation4], 4294967264 }
 0x46e   :  { %2739 = vsyncpa [#allocation4], 1 }

</bundles_post_ra>
